<compile_context>
chip_gen: v6e
topology: v6e:2x2x1
jax: 0.10.0
libtpu: 0.0.40
codegen_flags: <defaults>
</compile_context>

<pallas_src>
import jax
import jax.numpy as jnp
from jax.experimental import pallas as pl
from jax.experimental.pallas import tpu as pltpu


def lstm_fc_kernel(x_ref, wih_ref, whh_ref, b_ref, wfc_ref, bfc_ref,
                   out_ref, hN_ref, cN_ref, h_sc, c_sc, gx_sc):
    c_idx = pl.program_id(0)

    @pl.when(c_idx == 0)
    def _():
        h_sc[...] = jnp.zeros_like(h_sc)
        c_sc[...] = jnp.zeros_like(c_sc)

    bp, hp = h_sc.shape                 # padded batch, padded hidden
    rows = x_ref.shape[0]               # tc * bp (time-major, flattened)
    tc = rows // bp

    # (1) Hoisted input projection for the whole chunk: one big MXU matmul.
    #     Bias broadcast happens exactly once per chunk (not per timestep).
    gx_sc[...] = (jnp.dot(x_ref[...], wih_ref[...],
                          preferred_element_type=jnp.float32)
                  + b_ref[...])

    # (2) Serial recurrence: only h @ W_hh + elementwise math remains on the
    #     critical path.  Gate slices are 128-lane aligned (hp % 128 == 0), so
    #     the i/f/g/o split is pure vreg selection.
    def step(t, carry):
        h, c = carry
        row0 = pl.multiple_of(t * bp, bp)
        gates = (gx_sc[pl.ds(row0, bp), :]
                 + jnp.dot(h, whh_ref[...], preferred_element_type=jnp.float32))
        i_g = jax.nn.sigmoid(gates[:, 0 * hp:1 * hp])
        f_g = jax.nn.sigmoid(gates[:, 1 * hp:2 * hp])
        g_g = jnp.tanh(gates[:, 2 * hp:3 * hp])
        o_g = jax.nn.sigmoid(gates[:, 3 * hp:4 * hp])
        c = f_g * c + i_g * g_g
        h = o_g * jnp.tanh(c)
        return h, c

    h, c = jax.lax.fori_loop(0, tc, step, (h_sc[...], c_sc[...]),
                             unroll=(tc <= 16))
    h_sc[...] = h
    c_sc[...] = c

    # (3) Final Linear fused on the last chunk only; output block is lane-dense.
    @pl.when(c_idx == pl.num_programs(0) - 1)
    def _():
        hN_ref[...] = h
        cN_ref[...] = c
        out_ref[...] = (jnp.dot(h, wfc_ref[...],
                                preferred_element_type=jnp.float32)
                        + bfc_ref[...])


def _round_up(v, m):
    return ((v + m - 1) // m) * m


def _pad_gate_cols(w, h, hp):
    """(rows, 4h) -> (rows, 4hp): each PyTorch gate block [i,f,g,o] moved to a
    lane-aligned slot of width hp, zero padding elsewhere."""
    rows = w.shape[0]
    w4 = w.reshape(rows, 4, h)
    out = jnp.zeros((rows, 4, hp), w.dtype).at[:, :, :h].set(w4)
    return out.reshape(rows, 4 * hp)


def basic_lstm_2lr_forward(x, params, *, time_chunk=128):
    """Pallas implementation of BasicLSTM(model='2lr').forward with hidden=None.

    Returns (linear_out_last, (h_n, c_n)) just like the PyTorch module.
    """
    B, T, I = x.shape
    wih_t, whh_t, b = params["wih_t"], params["whh_t"], params["b"]
    wfc_t, bfc = params["wfc_t"], params["bfc"]
    H = whh_t.shape[0]
    O = wfc_t.shape[1]

    Bp = _round_up(max(B, 8), 8)     # f32 sublane count
    Hp = _round_up(H, 128)           # lane-align the gate boundaries
    Op = _round_up(O, 128)           # lane-dense final store

    # --- one-time parameter padding.  Zero pads keep padded h/c lanes exactly
    #     0 through the recurrence (sigmoid(0)*0 accumulation), so slicing at
    #     the end recovers the exact un-padded result.
    wih_p = _pad_gate_cols(wih_t.astype(jnp.float32), H, Hp)                 # (I, 4Hp)
    whh_p = jnp.zeros((Hp, 4 * Hp), jnp.float32).at[:H, :].set(
        _pad_gate_cols(whh_t.astype(jnp.float32), H, Hp))                    # (Hp, 4Hp)
    b_p = _pad_gate_cols(b.astype(jnp.float32), H, Hp)                       # (1, 4Hp)
    wfc_p = jnp.zeros((Hp, Op), jnp.float32).at[:H, :O].set(wfc_t)           # (Hp, Op)
    bfc_p = jnp.zeros((1, Op), jnp.float32).at[:, :O].set(bfc)               # (1, Op)

    # --- input: pad batch, go time-major and flatten so every timestep is a
    #     contiguous sublane-aligned (Bp, I) row block of one 2-D array.
    x_p = jnp.zeros((Bp, T, I), jnp.float32).at[:B].set(x.astype(jnp.float32))
    x_p = jnp.swapaxes(x_p, 0, 1).reshape(T * Bp, I)                         # (T*Bp, I)

    # Time chunking: grid=(1,) for short sequences (T=8 here); for long T use
    # the largest divisor <= time_chunk so grid overhead is amortized.
    if T <= time_chunk:
        tc = T
    else:
        tc = max(d for d in range(1, time_chunk + 1) if T % d == 0)
    n_chunks = T // tc

    full2 = lambda c: (0, 0)
    out, h_n, c_n = pl.pallas_call(
        lstm_fc_kernel,
        out_shape=(
            jax.ShapeDtypeStruct((Bp, Op), jnp.float32),
            jax.ShapeDtypeStruct((Bp, Hp), jnp.float32),
            jax.ShapeDtypeStruct((Bp, Hp), jnp.float32),
        ),
        grid_spec=pltpu.PrefetchScalarGridSpec(
            num_scalar_prefetch=0,
            grid=(n_chunks,),
            in_specs=[
                pl.BlockSpec((tc * Bp, I), lambda c: (c, 0)),   # x chunk (time-major)
                pl.BlockSpec((I, 4 * Hp), full2),
                pl.BlockSpec((Hp, 4 * Hp), full2),
                pl.BlockSpec((1, 4 * Hp), full2),
                pl.BlockSpec((Hp, Op), full2),
                pl.BlockSpec((1, Op), full2),
            ],
            out_specs=[
                pl.BlockSpec((Bp, Op), full2),
                pl.BlockSpec((Bp, Hp), full2),
                pl.BlockSpec((Bp, Hp), full2),
            ],
            scratch_shapes=[
                pltpu.VMEM((Bp, Hp), jnp.float32),            # h state
                pltpu.VMEM((Bp, Hp), jnp.float32),            # c state
                pltpu.VMEM((tc * Bp, 4 * Hp), jnp.float32),   # chunk x-projection
            ],
        ),
        compiler_params=pltpu.CompilerParams(
            dimension_semantics=("arbitrary",),
            vmem_limit_bytes=32 * 1024 * 1024),
    )(x_p, wih_p, whh_p, b_p, wfc_p, bfc_p)

    out = out[:B, :O]
    h_n = h_n[:B, :H]
    c_n = c_n[:B, :H]
    # PyTorch hidden shapes: (num_layers, B, H)
    return out, (h_n[None], c_n[None])


def reference_forward(x, params):
    """Pure-JAX reference (mirrors torch.nn.LSTM + Linear, last-step output)."""
    B, T, I = x.shape
    H = params["whh_t"].shape[0]
    wih_t, whh_t, b = params["wih_t"], params["whh_t"], params["b"]

    def step(carry, x_t):
        h, c = carry
        gates = x_t @ wih_t + h @ whh_t + b[0]
        i = jax.nn.sigmoid(gates[:, 0 * H:1 * H])
        f = jax.nn.sigmoid(gates[:, 1 * H:2 * H])
        g = jnp.tanh(gates[:, 2 * H:3 * H])
        o = jax.nn.sigmoid(gates[:, 3 * H:4 * H])
        c = f * c + i * g
        h = o * jnp.tanh(c)
        return (h, c), h

    h0 = jnp.zeros((B, H), jnp.float32)
    (h_n, c_n), _ = jax.lax.scan(step, (h0, h0), jnp.swapaxes(x, 0, 1))
    out = h_n @ params["wfc_t"] + params["bfc"][0]
    return out, (h_n[None], c_n[None])


def init_params(key, input_size, hidden_size, output_size):
    k = jax.random.split(key, 6)
    s_l = 1.0 / jnp.sqrt(hidden_size)
    w_ih = jax.random.uniform(k[0], (4 * hidden_size, input_size),
                              jnp.float32, -s_l, s_l)   # PyTorch (4H, I)
    w_hh = jax.random.uniform(k[1], (4 * hidden_size, hidden_size),
                              jnp.float32, -s_l, s_l)   # PyTorch (4H, H)
    b_ih = jax.random.uniform(k[2], (4 * hidden_size,), jnp.float32, -s_l, s_l)
    b_hh = jax.random.uniform(k[3], (4 * hidden_size,), jnp.float32, -s_l, s_l)
    w_fc = jax.random.uniform(k[4], (output_size, hidden_size),
                              jnp.float32, -s_l, s_l)   # PyTorch (O, H)
    b_fc = jax.random.uniform(k[5], (output_size,), jnp.float32, -s_l, s_l)
    return {
        "wih_t": w_ih.T,                       # (I, 4H)
        "whh_t": w_hh.T,                       # (H, 4H)
        "b": (b_ih + b_hh)[None, :],           # (1, 4H)  = b_ih + b_hh
        "wfc_t": w_fc.T,                       # (H, O)
        "bfc": b_fc[None, :],                  # (1, O)
    }


if __name__ == "__main__":
    B, T, I, H, O = 2, 8, 16, 32, 10
    key = jax.random.PRNGKey(0)
    kx, kp = jax.random.split(key)
    x = jax.random.normal(kx, (B, T, I), jnp.float32)
    params = init_params(kp, I, H, O)

    out, (h_n, c_n) = basic_lstm_2lr_forward(x, params)
    jax.block_until_ready((out, h_n, c_n))

    ref_out, (ref_h, ref_c) = reference_forward(x, params)
    assert out.shape == (B, O) and h_n.shape == (1, B, H) and c_n.shape == (1, B, H)
    assert jnp.allclose(out, ref_out, atol=1e-4, rtol=1e-4)
    assert jnp.allclose(h_n, ref_h, atol=1e-4, rtol=1e-4)
    assert jnp.allclose(c_n, ref_c, atol=1e-4, rtol=1e-4)

    print("KERNEL_OK")
</pallas_src>

<mosaic_0001>
module attributes {stable_mosaic.version = 11 : i64} {
  func.func @lstm_fc_kernel(%arg0: i32, %arg1: memref<64x16xf32, #tpu.memory_space<vmem>>, %arg2: memref<16x512xf32, #tpu.memory_space<vmem>>, %arg3: memref<128x512xf32, #tpu.memory_space<vmem>>, %arg4: memref<1x512xf32, #tpu.memory_space<vmem>>, %arg5: memref<128x128xf32, #tpu.memory_space<vmem>>, %arg6: memref<1x128xf32, #tpu.memory_space<vmem>>, %arg7: memref<8x128xf32, #tpu.memory_space<vmem>>, %arg8: memref<8x128xf32, #tpu.memory_space<vmem>>, %arg9: memref<8x128xf32, #tpu.memory_space<vmem>>, %arg10: memref<8x128xf32, #tpu.memory_space<vmem>>, %arg11: memref<8x128xf32, #tpu.memory_space<vmem>>, %arg12: memref<64x512xf32, #tpu.memory_space<vmem>>) attributes {dimension_semantics = [#tpu.dimension_semantics<arbitrary>], iteration_bounds = array<i64: 1>, scalar_prefetch = 0 : i64, scratch_operands = 3 : i64, tpu.core_type = #tpu.core_type<tc>, window_params = [{transform_indices = @transform_0, window_bounds = array<i64: 64, 16>}, {pipeline_mode = #tpu.pipeline_mode<synchronous>, transform_indices = @transform_1, window_bounds = array<i64: 16, 512>}, {pipeline_mode = #tpu.pipeline_mode<synchronous>, transform_indices = @transform_2, window_bounds = array<i64: 128, 512>}, {pipeline_mode = #tpu.pipeline_mode<synchronous>, transform_indices = @transform_3, window_bounds = array<i64: 1, 512>}, {pipeline_mode = #tpu.pipeline_mode<synchronous>, transform_indices = @transform_4, window_bounds = array<i64: 128, 128>}, {pipeline_mode = #tpu.pipeline_mode<synchronous>, transform_indices = @transform_5, window_bounds = array<i64: 1, 128>}, {pipeline_mode = #tpu.pipeline_mode<synchronous>, transform_indices = @transform_6, window_bounds = array<i64: 8, 128>}, {pipeline_mode = #tpu.pipeline_mode<synchronous>, transform_indices = @transform_7, window_bounds = array<i64: 8, 128>}, {pipeline_mode = #tpu.pipeline_mode<synchronous>, transform_indices = @transform_8, window_bounds = array<i64: 8, 128>}]} {
    %c0_i32 = arith.constant 0 : i32
    %0 = arith.cmpi eq, %arg0, %c0_i32 : i32
    %1 = arith.extui %0 : i1 to i32
    %c0_i32_0 = arith.constant 0 : i32
    %2 = arith.cmpi ne, %1, %c0_i32_0 : i32
    scf.if %2 {
      %cst_83 = arith.constant 0.000000e+00 : f32
      %273 = vector.broadcast %cst_83 : f32 to vector<8x128xf32>
      %c0_84 = arith.constant 0 : index
      %c0_85 = arith.constant 0 : index
      %274 = vector.load %arg10[%c0_84, %c0_85] : memref<8x128xf32, #tpu.memory_space<vmem>>, vector<8x128xf32>
      tpu.vector_store %arg10[%c0_84, %c0_85], %273 {strides = array<i32>} : memref<8x128xf32, #tpu.memory_space<vmem>>, vector<8x128xf32>,
      %cst_86 = arith.constant 0.000000e+00 : f32
      %275 = vector.broadcast %cst_86 : f32 to vector<8x128xf32>
      %c0_87 = arith.constant 0 : index
      %c0_88 = arith.constant 0 : index
      %276 = vector.load %arg11[%c0_87, %c0_88] : memref<8x128xf32, #tpu.memory_space<vmem>>, vector<8x128xf32>
      tpu.vector_store %arg11[%c0_87, %c0_88], %275 {strides = array<i32>} : memref<8x128xf32, #tpu.memory_space<vmem>>, vector<8x128xf32>,
    } else {
    }
    %c0 = arith.constant 0 : index
    %c0_1 = arith.constant 0 : index
    %3 = vector.load %arg1[%c0, %c0_1] : memref<64x16xf32, #tpu.memory_space<vmem>>, vector<64x16xf32>
    %c0_2 = arith.constant 0 : index
    %c0_3 = arith.constant 0 : index
    %4 = vector.load %arg2[%c0_2, %c0_3] : memref<16x512xf32, #tpu.memory_space<vmem>>, vector<16x512xf32>
    %cst = arith.constant dense<0.000000e+00> : vector<64x512xf32>
    %5 = tpu.matmul %3, %4, %cst {dimension_numbers = #tpu.dot_dimension_numbers<[1], [0], [0], [1], [0, 0, 1, 1], [], []>} : vector<64x16xf32>, vector<16x512xf32>, vector<64x512xf32> -> vector<64x512xf32>
    %c0_4 = arith.constant 0 : index
    %c0_5 = arith.constant 0 : index
    %6 = vector.load %arg4[%c0_4, %c0_5] : memref<1x512xf32, #tpu.memory_space<vmem>>, vector<1x512xf32>
    %7 = vector.broadcast %6 : vector<1x512xf32> to vector<64x512xf32>
    %8 = arith.addf %5, %7 : vector<64x512xf32>
    %c0_6 = arith.constant 0 : index
    %c0_7 = arith.constant 0 : index
    %9 = vector.load %arg12[%c0_6, %c0_7] : memref<64x512xf32, #tpu.memory_space<vmem>>, vector<64x512xf32>
    tpu.vector_store %arg12[%c0_6, %c0_7], %8 {strides = array<i32>} : memref<64x512xf32, #tpu.memory_space<vmem>>, vector<64x512xf32>,
    %c0_8 = arith.constant 0 : index
    %c0_9 = arith.constant 0 : index
    %10 = vector.load %arg10[%c0_8, %c0_9] : memref<8x128xf32, #tpu.memory_space<vmem>>, vector<8x128xf32>
    %c0_10 = arith.constant 0 : index
    %c0_11 = arith.constant 0 : index
    %11 = vector.load %arg11[%c0_10, %c0_11] : memref<8x128xf32, #tpu.memory_space<vmem>>, vector<8x128xf32>
    %c0_i32_12 = arith.constant 0 : i32
    %c8_i32 = arith.constant 8 : i32
    %12 = arith.muli %c0_i32_12, %c8_i32 : i32
    %13 = tpu.assume_multiple %12, 8 : i32
    %14 = arith.index_cast %13 : i32 to index
    %c0_13 = arith.constant 0 : index
    %15 = vector.load %arg12[%14, %c0_13] : memref<64x512xf32, #tpu.memory_space<vmem>>, vector<8x512xf32>
    %c0_14 = arith.constant 0 : index
    %c0_15 = arith.constant 0 : index
    %16 = vector.load %arg3[%c0_14, %c0_15] : memref<128x512xf32, #tpu.memory_space<vmem>>, vector<128x512xf32>
    %cst_16 = arith.constant dense<0.000000e+00> : vector<8x512xf32>
    %17 = tpu.matmul %10, %16, %cst_16 {dimension_numbers = #tpu.dot_dimension_numbers<[1], [0], [0], [1], [0, 0, 1, 1], [], []>} : vector<8x128xf32>, vector<128x512xf32>, vector<8x512xf32> -> vector<8x512xf32>
    %18 = arith.addf %15, %17 : vector<8x512xf32>
    %19 = vector.extract_strided_slice %18 {offsets = [0, 0], sizes = [8, 128], strides = [1, 1]} : vector<8x512xf32> to vector<8x128xf32>
    %20 = arith.negf %19 : vector<8x128xf32>
    %21 = math.exp %20 : vector<8x128xf32>
    %cst_17 = arith.constant 1.000000e+00 : f32
    %22 = vector.broadcast %cst_17 : f32 to vector<8x128xf32>
    %23 = arith.addf %22, %21 : vector<8x128xf32>
    %24 = arith.divf %22, %23 : vector<8x128xf32>
    %25 = vector.extract_strided_slice %18 {offsets = [0, 128], sizes = [8, 128], strides = [1, 1]} : vector<8x512xf32> to vector<8x128xf32>
    %26 = arith.negf %25 : vector<8x128xf32>
    %27 = math.exp %26 : vector<8x128xf32>
    %cst_18 = arith.constant 1.000000e+00 : f32
    %28 = vector.broadcast %cst_18 : f32 to vector<8x128xf32>
    %29 = arith.addf %28, %27 : vector<8x128xf32>
    %30 = arith.divf %28, %29 : vector<8x128xf32>
    %31 = vector.extract_strided_slice %18 {offsets = [0, 256], sizes = [8, 128], strides = [1, 1]} : vector<8x512xf32> to vector<8x128xf32>
    %32 = math.tanh %31 : vector<8x128xf32>
    %33 = vector.extract_strided_slice %18 {offsets = [0, 384], sizes = [8, 128], strides = [1, 1]} : vector<8x512xf32> to vector<8x128xf32>
    %34 = arith.negf %33 : vector<8x128xf32>
    %35 = math.exp %34 : vector<8x128xf32>
    %cst_19 = arith.constant 1.000000e+00 : f32
    %36 = vector.broadcast %cst_19 : f32 to vector<8x128xf32>
    %37 = arith.addf %36, %35 : vector<8x128xf32>
    %38 = arith.divf %36, %37 : vector<8x128xf32>
    %39 = arith.mulf %30, %11 : vector<8x128xf32>
    %40 = arith.mulf %24, %32 : vector<8x128xf32>
    %41 = arith.addf %39, %40 : vector<8x128xf32>
    %42 = math.tanh %41 : vector<8x128xf32>
    %43 = arith.mulf %38, %42 : vector<8x128xf32>
    %c1_i32 = arith.constant 1 : i32
    %c8_i32_20 = arith.constant 8 : i32
    %44 = arith.muli %c1_i32, %c8_i32_20 : i32
    %45 = tpu.assume_multiple %44, 8 : i32
    %46 = arith.index_cast %45 : i32 to index
    %c0_21 = arith.constant 0 : index
    %47 = vector.load %arg12[%46, %c0_21] : memref<64x512xf32, #tpu.memory_space<vmem>>, vector<8x512xf32>
    %c0_22 = arith.constant 0 : index
    %c0_23 = arith.constant 0 : index
    %48 = vector.load %arg3[%c0_22, %c0_23] : memref<128x512xf32, #tpu.memory_space<vmem>>, vector<128x512xf32>
    %cst_24 = arith.constant dense<0.000000e+00> : vector<8x512xf32>
    %49 = tpu.matmul %43, %48, %cst_24 {dimension_numbers = #tpu.dot_dimension_numbers<[1], [0], [0], [1], [0, 0, 1, 1], [], []>} : vector<8x128xf32>, vector<128x512xf32>, vector<8x512xf32> -> vector<8x512xf32>
    %50 = arith.addf %47, %49 : vector<8x512xf32>
    %51 = vector.extract_strided_slice %50 {offsets = [0, 0], sizes = [8, 128], strides = [1, 1]} : vector<8x512xf32> to vector<8x128xf32>
    %52 = arith.negf %51 : vector<8x128xf32>
    %53 = math.exp %52 : vector<8x128xf32>
    %cst_25 = arith.constant 1.000000e+00 : f32
    %54 = vector.broadcast %cst_25 : f32 to vector<8x128xf32>
    %55 = arith.addf %54, %53 : vector<8x128xf32>
    %56 = arith.divf %54, %55 : vector<8x128xf32>
    %57 = vector.extract_strided_slice %50 {offsets = [0, 128], sizes = [8, 128], strides = [1, 1]} : vector<8x512xf32> to vector<8x128xf32>
    %58 = arith.negf %57 : vector<8x128xf32>
    %59 = math.exp %58 : vector<8x128xf32>
    %cst_26 = arith.constant 1.000000e+00 : f32
    %60 = vector.broadcast %cst_26 : f32 to vector<8x128xf32>
    %61 = arith.addf %60, %59 : vector<8x128xf32>
    %62 = arith.divf %60, %61 : vector<8x128xf32>
    %63 = vector.extract_strided_slice %50 {offsets = [0, 256], sizes = [8, 128], strides = [1, 1]} : vector<8x512xf32> to vector<8x128xf32>
    %64 = math.tanh %63 : vector<8x128xf32>
    %65 = vector.extract_strided_slice %50 {offsets = [0, 384], sizes = [8, 128], strides = [1, 1]} : vector<8x512xf32> to vector<8x128xf32>
    %66 = arith.negf %65 : vector<8x128xf32>
    %67 = math.exp %66 : vector<8x128xf32>
    %cst_27 = arith.constant 1.000000e+00 : f32
    %68 = vector.broadcast %cst_27 : f32 to vector<8x128xf32>
    %69 = arith.addf %68, %67 : vector<8x128xf32>
    %70 = arith.divf %68, %69 : vector<8x128xf32>
    %71 = arith.mulf %62, %41 : vector<8x128xf32>
    %72 = arith.mulf %56, %64 : vector<8x128xf32>
    %73 = arith.addf %71, %72 : vector<8x128xf32>
    %74 = math.tanh %73 : vector<8x128xf32>
    %75 = arith.mulf %70, %74 : vector<8x128xf32>
    %c2_i32 = arith.constant 2 : i32
    %c8_i32_28 = arith.constant 8 : i32
    %76 = arith.muli %c2_i32, %c8_i32_28 : i32
    %77 = tpu.assume_multiple %76, 8 : i32
    %78 = arith.index_cast %77 : i32 to index
    %c0_29 = arith.constant 0 : index
    %79 = vector.load %arg12[%78, %c0_29] : memref<64x512xf32, #tpu.memory_space<vmem>>, vector<8x512xf32>
    %c0_30 = arith.constant 0 : index
    %c0_31 = arith.constant 0 : index
    %80 = vector.load %arg3[%c0_30, %c0_31] : memref<128x512xf32, #tpu.memory_space<vmem>>, vector<128x512xf32>
    %cst_32 = arith.constant dense<0.000000e+00> : vector<8x512xf32>
    %81 = tpu.matmul %75, %80, %cst_32 {dimension_numbers = #tpu.dot_dimension_numbers<[1], [0], [0], [1], [0, 0, 1, 1], [], []>} : vector<8x128xf32>, vector<128x512xf32>, vector<8x512xf32> -> vector<8x512xf32>
    %82 = arith.addf %79, %81 : vector<8x512xf32>
    %83 = vector.extract_strided_slice %82 {offsets = [0, 0], sizes = [8, 128], strides = [1, 1]} : vector<8x512xf32> to vector<8x128xf32>
    %84 = arith.negf %83 : vector<8x128xf32>
    %85 = math.exp %84 : vector<8x128xf32>
    %cst_33 = arith.constant 1.000000e+00 : f32
    %86 = vector.broadcast %cst_33 : f32 to vector<8x128xf32>
    %87 = arith.addf %86, %85 : vector<8x128xf32>
    %88 = arith.divf %86, %87 : vector<8x128xf32>
    %89 = vector.extract_strided_slice %82 {offsets = [0, 128], sizes = [8, 128], strides = [1, 1]} : vector<8x512xf32> to vector<8x128xf32>
    %90 = arith.negf %89 : vector<8x128xf32>
    %91 = math.exp %90 : vector<8x128xf32>
    %cst_34 = arith.constant 1.000000e+00 : f32
    %92 = vector.broadcast %cst_34 : f32 to vector<8x128xf32>
    %93 = arith.addf %92, %91 : vector<8x128xf32>
    %94 = arith.divf %92, %93 : vector<8x128xf32>
    %95 = vector.extract_strided_slice %82 {offsets = [0, 256], sizes = [8, 128], strides = [1, 1]} : vector<8x512xf32> to vector<8x128xf32>
    %96 = math.tanh %95 : vector<8x128xf32>
    %97 = vector.extract_strided_slice %82 {offsets = [0, 384], sizes = [8, 128], strides = [1, 1]} : vector<8x512xf32> to vector<8x128xf32>
    %98 = arith.negf %97 : vector<8x128xf32>
    %99 = math.exp %98 : vector<8x128xf32>
    %cst_35 = arith.constant 1.000000e+00 : f32
    %100 = vector.broadcast %cst_35 : f32 to vector<8x128xf32>
    %101 = arith.addf %100, %99 : vector<8x128xf32>
    %102 = arith.divf %100, %101 : vector<8x128xf32>
    %103 = arith.mulf %94, %73 : vector<8x128xf32>
    %104 = arith.mulf %88, %96 : vector<8x128xf32>
    %105 = arith.addf %103, %104 : vector<8x128xf32>
    %106 = math.tanh %105 : vector<8x128xf32>
    %107 = arith.mulf %102, %106 : vector<8x128xf32>
    %c3_i32 = arith.constant 3 : i32
    %c8_i32_36 = arith.constant 8 : i32
    %108 = arith.muli %c3_i32, %c8_i32_36 : i32
    %109 = tpu.assume_multiple %108, 8 : i32
    %110 = arith.index_cast %109 : i32 to index
    %c0_37 = arith.constant 0 : index
    %111 = vector.load %arg12[%110, %c0_37] : memref<64x512xf32, #tpu.memory_space<vmem>>, vector<8x512xf32>
    %c0_38 = arith.constant 0 : index
    %c0_39 = arith.constant 0 : index
    %112 = vector.load %arg3[%c0_38, %c0_39] : memref<128x512xf32, #tpu.memory_space<vmem>>, vector<128x512xf32>
    %cst_40 = arith.constant dense<0.000000e+00> : vector<8x512xf32>
    %113 = tpu.matmul %107, %112, %cst_40 {dimension_numbers = #tpu.dot_dimension_numbers<[1], [0], [0], [1], [0, 0, 1, 1], [], []>} : vector<8x128xf32>, vector<128x512xf32>, vector<8x512xf32> -> vector<8x512xf32>
    %114 = arith.addf %111, %113 : vector<8x512xf32>
    %115 = vector.extract_strided_slice %114 {offsets = [0, 0], sizes = [8, 128], strides = [1, 1]} : vector<8x512xf32> to vector<8x128xf32>
    %116 = arith.negf %115 : vector<8x128xf32>
    %117 = math.exp %116 : vector<8x128xf32>
    %cst_41 = arith.constant 1.000000e+00 : f32
    %118 = vector.broadcast %cst_41 : f32 to vector<8x128xf32>
    %119 = arith.addf %118, %117 : vector<8x128xf32>
    %120 = arith.divf %118, %119 : vector<8x128xf32>
    %121 = vector.extract_strided_slice %114 {offsets = [0, 128], sizes = [8, 128], strides = [1, 1]} : vector<8x512xf32> to vector<8x128xf32>
    %122 = arith.negf %121 : vector<8x128xf32>
    %123 = math.exp %122 : vector<8x128xf32>
    %cst_42 = arith.constant 1.000000e+00 : f32
    %124 = vector.broadcast %cst_42 : f32 to vector<8x128xf32>
    %125 = arith.addf %124, %123 : vector<8x128xf32>
    %126 = arith.divf %124, %125 : vector<8x128xf32>
    %127 = vector.extract_strided_slice %114 {offsets = [0, 256], sizes = [8, 128], strides = [1, 1]} : vector<8x512xf32> to vector<8x128xf32>
    %128 = math.tanh %127 : vector<8x128xf32>
    %129 = vector.extract_strided_slice %114 {offsets = [0, 384], sizes = [8, 128], strides = [1, 1]} : vector<8x512xf32> to vector<8x128xf32>
    %130 = arith.negf %129 : vector<8x128xf32>
    %131 = math.exp %130 : vector<8x128xf32>
    %cst_43 = arith.constant 1.000000e+00 : f32
    %132 = vector.broadcast %cst_43 : f32 to vector<8x128xf32>
    %133 = arith.addf %132, %131 : vector<8x128xf32>
    %134 = arith.divf %132, %133 : vector<8x128xf32>
    %135 = arith.mulf %126, %105 : vector<8x128xf32>
    %136 = arith.mulf %120, %128 : vector<8x128xf32>
    %137 = arith.addf %135, %136 : vector<8x128xf32>
    %138 = math.tanh %137 : vector<8x128xf32>
    %139 = arith.mulf %134, %138 : vector<8x128xf32>
    %c4_i32 = arith.constant 4 : i32
    %c8_i32_44 = arith.constant 8 : i32
    %140 = arith.muli %c4_i32, %c8_i32_44 : i32
    %141 = tpu.assume_multiple %140, 8 : i32
    %142 = arith.index_cast %141 : i32 to index
    %c0_45 = arith.constant 0 : index
    %143 = vector.load %arg12[%142, %c0_45] : memref<64x512xf32, #tpu.memory_space<vmem>>, vector<8x512xf32>
    %c0_46 = arith.constant 0 : index
    %c0_47 = arith.constant 0 : index
    %144 = vector.load %arg3[%c0_46, %c0_47] : memref<128x512xf32, #tpu.memory_space<vmem>>, vector<128x512xf32>
    %cst_48 = arith.constant dense<0.000000e+00> : vector<8x512xf32>
    %145 = tpu.matmul %139, %144, %cst_48 {dimension_numbers = #tpu.dot_dimension_numbers<[1], [0], [0], [1], [0, 0, 1, 1], [], []>} : vector<8x128xf32>, vector<128x512xf32>, vector<8x512xf32> -> vector<8x512xf32>
    %146 = arith.addf %143, %145 : vector<8x512xf32>
    %147 = vector.extract_strided_slice %146 {offsets = [0, 0], sizes = [8, 128], strides = [1, 1]} : vector<8x512xf32> to vector<8x128xf32>
    %148 = arith.negf %147 : vector<8x128xf32>
    %149 = math.exp %148 : vector<8x128xf32>
    %cst_49 = arith.constant 1.000000e+00 : f32
    %150 = vector.broadcast %cst_49 : f32 to vector<8x128xf32>
    %151 = arith.addf %150, %149 : vector<8x128xf32>
    %152 = arith.divf %150, %151 : vector<8x128xf32>
    %153 = vector.extract_strided_slice %146 {offsets = [0, 128], sizes = [8, 128], strides = [1, 1]} : vector<8x512xf32> to vector<8x128xf32>
    %154 = arith.negf %153 : vector<8x128xf32>
    %155 = math.exp %154 : vector<8x128xf32>
    %cst_50 = arith.constant 1.000000e+00 : f32
    %156 = vector.broadcast %cst_50 : f32 to vector<8x128xf32>
    %157 = arith.addf %156, %155 : vector<8x128xf32>
    %158 = arith.divf %156, %157 : vector<8x128xf32>
    %159 = vector.extract_strided_slice %146 {offsets = [0, 256], sizes = [8, 128], strides = [1, 1]} : vector<8x512xf32> to vector<8x128xf32>
    %160 = math.tanh %159 : vector<8x128xf32>
    %161 = vector.extract_strided_slice %146 {offsets = [0, 384], sizes = [8, 128], strides = [1, 1]} : vector<8x512xf32> to vector<8x128xf32>
    %162 = arith.negf %161 : vector<8x128xf32>
    %163 = math.exp %162 : vector<8x128xf32>
    %cst_51 = arith.constant 1.000000e+00 : f32
    %164 = vector.broadcast %cst_51 : f32 to vector<8x128xf32>
    %165 = arith.addf %164, %163 : vector<8x128xf32>
    %166 = arith.divf %164, %165 : vector<8x128xf32>
    %167 = arith.mulf %158, %137 : vector<8x128xf32>
    %168 = arith.mulf %152, %160 : vector<8x128xf32>
    %169 = arith.addf %167, %168 : vector<8x128xf32>
    %170 = math.tanh %169 : vector<8x128xf32>
    %171 = arith.mulf %166, %170 : vector<8x128xf32>
    %c5_i32 = arith.constant 5 : i32
    %c8_i32_52 = arith.constant 8 : i32
    %172 = arith.muli %c5_i32, %c8_i32_52 : i32
    %173 = tpu.assume_multiple %172, 8 : i32
    %174 = arith.index_cast %173 : i32 to index
    %c0_53 = arith.constant 0 : index
    %175 = vector.load %arg12[%174, %c0_53] : memref<64x512xf32, #tpu.memory_space<vmem>>, vector<8x512xf32>
    %c0_54 = arith.constant 0 : index
    %c0_55 = arith.constant 0 : index
    %176 = vector.load %arg3[%c0_54, %c0_55] : memref<128x512xf32, #tpu.memory_space<vmem>>, vector<128x512xf32>
    %cst_56 = arith.constant dense<0.000000e+00> : vector<8x512xf32>
    %177 = tpu.matmul %171, %176, %cst_56 {dimension_numbers = #tpu.dot_dimension_numbers<[1], [0], [0], [1], [0, 0, 1, 1], [], []>} : vector<8x128xf32>, vector<128x512xf32>, vector<8x512xf32> -> vector<8x512xf32>
    %178 = arith.addf %175, %177 : vector<8x512xf32>
    %179 = vector.extract_strided_slice %178 {offsets = [0, 0], sizes = [8, 128], strides = [1, 1]} : vector<8x512xf32> to vector<8x128xf32>
    %180 = arith.negf %179 : vector<8x128xf32>
    %181 = math.exp %180 : vector<8x128xf32>
    %cst_57 = arith.constant 1.000000e+00 : f32
    %182 = vector.broadcast %cst_57 : f32 to vector<8x128xf32>
    %183 = arith.addf %182, %181 : vector<8x128xf32>
    %184 = arith.divf %182, %183 : vector<8x128xf32>
    %185 = vector.extract_strided_slice %178 {offsets = [0, 128], sizes = [8, 128], strides = [1, 1]} : vector<8x512xf32> to vector<8x128xf32>
    %186 = arith.negf %185 : vector<8x128xf32>
    %187 = math.exp %186 : vector<8x128xf32>
    %cst_58 = arith.constant 1.000000e+00 : f32
    %188 = vector.broadcast %cst_58 : f32 to vector<8x128xf32>
    %189 = arith.addf %188, %187 : vector<8x128xf32>
    %190 = arith.divf %188, %189 : vector<8x128xf32>
    %191 = vector.extract_strided_slice %178 {offsets = [0, 256], sizes = [8, 128], strides = [1, 1]} : vector<8x512xf32> to vector<8x128xf32>
    %192 = math.tanh %191 : vector<8x128xf32>
    %193 = vector.extract_strided_slice %178 {offsets = [0, 384], sizes = [8, 128], strides = [1, 1]} : vector<8x512xf32> to vector<8x128xf32>
    %194 = arith.negf %193 : vector<8x128xf32>
    %195 = math.exp %194 : vector<8x128xf32>
    %cst_59 = arith.constant 1.000000e+00 : f32
    %196 = vector.broadcast %cst_59 : f32 to vector<8x128xf32>
    %197 = arith.addf %196, %195 : vector<8x128xf32>
    %198 = arith.divf %196, %197 : vector<8x128xf32>
    %199 = arith.mulf %190, %169 : vector<8x128xf32>
    %200 = arith.mulf %184, %192 : vector<8x128xf32>
    %201 = arith.addf %199, %200 : vector<8x128xf32>
    %202 = math.tanh %201 : vector<8x128xf32>
    %203 = arith.mulf %198, %202 : vector<8x128xf32>
    %c6_i32 = arith.constant 6 : i32
    %c8_i32_60 = arith.constant 8 : i32
    %204 = arith.muli %c6_i32, %c8_i32_60 : i32
    %205 = tpu.assume_multiple %204, 8 : i32
    %206 = arith.index_cast %205 : i32 to index
    %c0_61 = arith.constant 0 : index
    %207 = vector.load %arg12[%206, %c0_61] : memref<64x512xf32, #tpu.memory_space<vmem>>, vector<8x512xf32>
    %c0_62 = arith.constant 0 : index
    %c0_63 = arith.constant 0 : index
    %208 = vector.load %arg3[%c0_62, %c0_63] : memref<128x512xf32, #tpu.memory_space<vmem>>, vector<128x512xf32>
    %cst_64 = arith.constant dense<0.000000e+00> : vector<8x512xf32>
    %209 = tpu.matmul %203, %208, %cst_64 {dimension_numbers = #tpu.dot_dimension_numbers<[1], [0], [0], [1], [0, 0, 1, 1], [], []>} : vector<8x128xf32>, vector<128x512xf32>, vector<8x512xf32> -> vector<8x512xf32>
    %210 = arith.addf %207, %209 : vector<8x512xf32>
    %211 = vector.extract_strided_slice %210 {offsets = [0, 0], sizes = [8, 128], strides = [1, 1]} : vector<8x512xf32> to vector<8x128xf32>
    %212 = arith.negf %211 : vector<8x128xf32>
    %213 = math.exp %212 : vector<8x128xf32>
    %cst_65 = arith.constant 1.000000e+00 : f32
    %214 = vector.broadcast %cst_65 : f32 to vector<8x128xf32>
    %215 = arith.addf %214, %213 : vector<8x128xf32>
    %216 = arith.divf %214, %215 : vector<8x128xf32>
    %217 = vector.extract_strided_slice %210 {offsets = [0, 128], sizes = [8, 128], strides = [1, 1]} : vector<8x512xf32> to vector<8x128xf32>
    %218 = arith.negf %217 : vector<8x128xf32>
    %219 = math.exp %218 : vector<8x128xf32>
    %cst_66 = arith.constant 1.000000e+00 : f32
    %220 = vector.broadcast %cst_66 : f32 to vector<8x128xf32>
    %221 = arith.addf %220, %219 : vector<8x128xf32>
    %222 = arith.divf %220, %221 : vector<8x128xf32>
    %223 = vector.extract_strided_slice %210 {offsets = [0, 256], sizes = [8, 128], strides = [1, 1]} : vector<8x512xf32> to vector<8x128xf32>
    %224 = math.tanh %223 : vector<8x128xf32>
    %225 = vector.extract_strided_slice %210 {offsets = [0, 384], sizes = [8, 128], strides = [1, 1]} : vector<8x512xf32> to vector<8x128xf32>
    %226 = arith.negf %225 : vector<8x128xf32>
    %227 = math.exp %226 : vector<8x128xf32>
    %cst_67 = arith.constant 1.000000e+00 : f32
    %228 = vector.broadcast %cst_67 : f32 to vector<8x128xf32>
    %229 = arith.addf %228, %227 : vector<8x128xf32>
    %230 = arith.divf %228, %229 : vector<8x128xf32>
    %231 = arith.mulf %222, %201 : vector<8x128xf32>
    %232 = arith.mulf %216, %224 : vector<8x128xf32>
    %233 = arith.addf %231, %232 : vector<8x128xf32>
    %234 = math.tanh %233 : vector<8x128xf32>
    %235 = arith.mulf %230, %234 : vector<8x128xf32>
    %c7_i32 = arith.constant 7 : i32
    %c8_i32_68 = arith.constant 8 : i32
    %236 = arith.muli %c7_i32, %c8_i32_68 : i32
    %237 = tpu.assume_multiple %236, 8 : i32
    %238 = arith.index_cast %237 : i32 to index
    %c0_69 = arith.constant 0 : index
    %239 = vector.load %arg12[%238, %c0_69] : memref<64x512xf32, #tpu.memory_space<vmem>>, vector<8x512xf32>
    %c0_70 = arith.constant 0 : index
    %c0_71 = arith.constant 0 : index
    %240 = vector.load %arg3[%c0_70, %c0_71] : memref<128x512xf32, #tpu.memory_space<vmem>>, vector<128x512xf32>
    %cst_72 = arith.constant dense<0.000000e+00> : vector<8x512xf32>
    %241 = tpu.matmul %235, %240, %cst_72 {dimension_numbers = #tpu.dot_dimension_numbers<[1], [0], [0], [1], [0, 0, 1, 1], [], []>} : vector<8x128xf32>, vector<128x512xf32>, vector<8x512xf32> -> vector<8x512xf32>
    %242 = arith.addf %239, %241 : vector<8x512xf32>
    %243 = vector.extract_strided_slice %242 {offsets = [0, 0], sizes = [8, 128], strides = [1, 1]} : vector<8x512xf32> to vector<8x128xf32>
    %244 = arith.negf %243 : vector<8x128xf32>
    %245 = math.exp %244 : vector<8x128xf32>
    %cst_73 = arith.constant 1.000000e+00 : f32
    %246 = vector.broadcast %cst_73 : f32 to vector<8x128xf32>
    %247 = arith.addf %246, %245 : vector<8x128xf32>
    %248 = arith.divf %246, %247 : vector<8x128xf32>
    %249 = vector.extract_strided_slice %242 {offsets = [0, 128], sizes = [8, 128], strides = [1, 1]} : vector<8x512xf32> to vector<8x128xf32>
    %250 = arith.negf %249 : vector<8x128xf32>
    %251 = math.exp %250 : vector<8x128xf32>
    %cst_74 = arith.constant 1.000000e+00 : f32
    %252 = vector.broadcast %cst_74 : f32 to vector<8x128xf32>
    %253 = arith.addf %252, %251 : vector<8x128xf32>
    %254 = arith.divf %252, %253 : vector<8x128xf32>
    %255 = vector.extract_strided_slice %242 {offsets = [0, 256], sizes = [8, 128], strides = [1, 1]} : vector<8x512xf32> to vector<8x128xf32>
    %256 = math.tanh %255 : vector<8x128xf32>
    %257 = vector.extract_strided_slice %242 {offsets = [0, 384], sizes = [8, 128], strides = [1, 1]} : vector<8x512xf32> to vector<8x128xf32>
    %258 = arith.negf %257 : vector<8x128xf32>
    %259 = math.exp %258 : vector<8x128xf32>
    %cst_75 = arith.constant 1.000000e+00 : f32
    %260 = vector.broadcast %cst_75 : f32 to vector<8x128xf32>
    %261 = arith.addf %260, %259 : vector<8x128xf32>
    %262 = arith.divf %260, %261 : vector<8x128xf32>
    %263 = arith.mulf %254, %233 : vector<8x128xf32>
    %264 = arith.mulf %248, %256 : vector<8x128xf32>
    %265 = arith.addf %263, %264 : vector<8x128xf32>
    %266 = math.tanh %265 : vector<8x128xf32>
    %267 = arith.mulf %262, %266 : vector<8x128xf32>
    %c8_i32_76 = arith.constant 8 : i32
    %c0_77 = arith.constant 0 : index
    %c0_78 = arith.constant 0 : index
    %268 = vector.load %arg10[%c0_77, %c0_78] : memref<8x128xf32, #tpu.memory_space<vmem>>, vector<8x128xf32>
    tpu.vector_store %arg10[%c0_77, %c0_78], %267 {strides = array<i32>} : memref<8x128xf32, #tpu.memory_space<vmem>>, vector<8x128xf32>,
    %c0_79 = arith.constant 0 : index
    %c0_80 = arith.constant 0 : index
    %269 = vector.load %arg11[%c0_79, %c0_80] : memref<8x128xf32, #tpu.memory_space<vmem>>, vector<8x128xf32>
    tpu.vector_store %arg11[%c0_79, %c0_80], %265 {strides = array<i32>} : memref<8x128xf32, #tpu.memory_space<vmem>>, vector<8x128xf32>,
    %c0_i32_81 = arith.constant 0 : i32
    %270 = arith.cmpi eq, %arg0, %c0_i32_81 : i32
    %271 = arith.extui %270 : i1 to i32
    %c0_i32_82 = arith.constant 0 : i32
    %272 = arith.cmpi ne, %271, %c0_i32_82 : i32
    scf.if %272 {
      %c0_83 = arith.constant 0 : index
      %c0_84 = arith.constant 0 : index
      %273 = vector.load %arg8[%c0_83, %c0_84] : memref<8x128xf32, #tpu.memory_space<vmem>>, vector<8x128xf32>
      tpu.vector_store %arg8[%c0_83, %c0_84], %267 {strides = array<i32>} : memref<8x128xf32, #tpu.memory_space<vmem>>, vector<8x128xf32>,
      %c0_85 = arith.constant 0 : index
      %c0_86 = arith.constant 0 : index
      %274 = vector.load %arg9[%c0_85, %c0_86] : memref<8x128xf32, #tpu.memory_space<vmem>>, vector<8x128xf32>
      tpu.vector_store %arg9[%c0_85, %c0_86], %265 {strides = array<i32>} : memref<8x128xf32, #tpu.memory_space<vmem>>, vector<8x128xf32>,
      %c0_87 = arith.constant 0 : index
      %c0_88 = arith.constant 0 : index
      %275 = vector.load %arg5[%c0_87, %c0_88] : memref<128x128xf32, #tpu.memory_space<vmem>>, vector<128x128xf32>
      %cst_89 = arith.constant dense<0.000000e+00> : vector<8x128xf32>
      %276 = tpu.matmul %267, %275, %cst_89 {dimension_numbers = #tpu.dot_dimension_numbers<[1], [0], [0], [1], [0, 0, 1, 1], [], []>} : vector<8x128xf32>, vector<128x128xf32>, vector<8x128xf32> -> vector<8x128xf32>
      %c0_90 = arith.constant 0 : index
      %c0_91 = arith.constant 0 : index
      %277 = vector.load %arg6[%c0_90, %c0_91] : memref<1x128xf32, #tpu.memory_space<vmem>>, vector<1x128xf32>
      %278 = vector.broadcast %277 : vector<1x128xf32> to vector<8x128xf32>
      %279 = arith.addf %276, %278 : vector<8x128xf32>
      %c0_92 = arith.constant 0 : index
      %c0_93 = arith.constant 0 : index
      %280 = vector.load %arg7[%c0_92, %c0_93] : memref<8x128xf32, #tpu.memory_space<vmem>>, vector<8x128xf32>
      tpu.vector_store %arg7[%c0_92, %c0_93], %279 {strides = array<i32>} : memref<8x128xf32, #tpu.memory_space<vmem>>, vector<8x128xf32>,
    } else {
    }
    return
  }
  func.func @transform_0(%arg0: i32) -> (i32, i32) {
    %c0_i32 = arith.constant 0 : i32
    %c0_i32_0 = arith.constant 0 : i32
    return %arg0, %c0_i32 : i32, i32
  }
  func.func @transform_1(%arg0: i32) -> (i32, i32) {
    %c0_i32 = arith.constant 0 : i32
    %c0_i32_0 = arith.constant 0 : i32
    %c0_i32_1 = arith.constant 0 : i32
    return %c0_i32, %c0_i32_0 : i32, i32
  }
  func.func @transform_2(%arg0: i32) -> (i32, i32) {
    %c0_i32 = arith.constant 0 : i32
    %c0_i32_0 = arith.constant 0 : i32
    %c0_i32_1 = arith.constant 0 : i32
    return %c0_i32, %c0_i32_0 : i32, i32
  }
  func.func @transform_3(%arg0: i32) -> (i32, i32) {
    %c0_i32 = arith.constant 0 : i32
    %c0_i32_0 = arith.constant 0 : i32
    %c0_i32_1 = arith.constant 0 : i32
    return %c0_i32, %c0_i32_0 : i32, i32
  }
  func.func @transform_4(%arg0: i32) -> (i32, i32) {
    %c0_i32 = arith.constant 0 : i32
    %c0_i32_0 = arith.constant 0 : i32
    %c0_i32_1 = arith.constant 0 : i32
    return %c0_i32, %c0_i32_0 : i32, i32
  }
  func.func @transform_5(%arg0: i32) -> (i32, i32) {
    %c0_i32 = arith.constant 0 : i32
    %c0_i32_0 = arith.constant 0 : i32
    %c0_i32_1 = arith.constant 0 : i32
    return %c0_i32, %c0_i32_0 : i32, i32
  }
  func.func @transform_6(%arg0: i32) -> (i32, i32) {
    %c0_i32 = arith.constant 0 : i32
    %c0_i32_0 = arith.constant 0 : i32
    %c0_i32_1 = arith.constant 0 : i32
    return %c0_i32, %c0_i32_0 : i32, i32
  }
  func.func @transform_7(%arg0: i32) -> (i32, i32) {
    %c0_i32 = arith.constant 0 : i32
    %c0_i32_0 = arith.constant 0 : i32
    %c0_i32_1 = arith.constant 0 : i32
    return %c0_i32, %c0_i32_0 : i32, i32
  }
  func.func @transform_8(%arg0: i32) -> (i32, i32) {
    %c0_i32 = arith.constant 0 : i32
    %c0_i32_0 = arith.constant 0 : i32
    %c0_i32_1 = arith.constant 0 : i32
    return %c0_i32, %c0_i32_0 : i32, i32
  }
}

</mosaic_0001>

<bundles_post_ra>
// kernel: tpu_custom_call.1
= control target key start
LH: loop header
LB: loop body
LE: loop exit
PB: predicated region body
PF: predicated region fallthrough
CT: control target
= control target key end

     0   :  { %14 = vsyncpa [#allocation6], 0  ;;  %s3524_s0 = inlined_call_operand.vmem [shape: f32[64,16], index: 0, kind: input, shape index: {}]   ;;  %s3525_s1 = inlined_call_operand.vmem [shape: f32[16,512], index: 1, kind: input, shape index: {}]   ;;  %s3526_s2 = inlined_call_operand.hbm [shape: f32[128,512], index: 2, kind: input, shape index: {}]   ;;  %s3527_s3 = inlined_call_operand.vmem [shape: f32[1,512], index: 3, kind: input, shape index: {}]   ;;  %s3528_s4 = inlined_call_operand.hbm [shape: f32[128,128], index: 4, kind: input, shape index: {}]   ;;  %s3529_s5 = inlined_call_operand.vmem [shape: f32[1,128], index: 5, kind: input, shape index: {}]   ;;  %s3530_s6 = inlined_call_operand.hbm [shape: f32[8,128], index: 6, kind: output, shape index: {0}]   ;;  %s3531_s7 = inlined_call_operand.hbm [shape: f32[8,128], index: 7, kind: output, shape index: {1}]   ;;  %s3532_s8 = inlined_call_operand.hbm [shape: f32[8,128], index: 8, kind: output, shape index: {2}]  }
   0x1   :  { %15 = vsyncpa [#allocation9], 0 }
   0x2   :  { %16 = vsyncpa [#allocation7], 0 }
   0x3   :  { %17 = vsyncpa [#allocation12], 0  ;;  %s2420_s27 = smov [#allocation5]  }
   0x4   :  { %s27_s28 = sshll.u32 %s2420_s27, 4  ;;  %s28_s28 = int_to_ptr.vmem [resolvable:$true] %s27_s28 }
   0x5   :  { %s2320_s29 = scalar_lea.vmem %s28_s28, 8192  ;;  %p2325_p1 = scmp.lt.s32.totalorder %s28_s28, %s28_s28 }
   0x6   :  { %p2321_p0 = scmp.ne.s32.totalorder %s28_s28, %s2320_s29  ;;  %p2326_p2 = scmp.lt.s32.totalorder %s2320_s29, %s2320_s29 }
   0x8   :  { %p2327_p3 = por %p2326_p2, %p2325_p1 }
   0xa   :  { %p2328_p4 = pnand %p2327_p3, %p2321_p0 }
   0xc   :  { %2331 = shalt.err (!%p2328_p4)
}
   0xd   :  { %s2421_s30 = smov 512   ;;  %s2422_s9 = smov 32  }
   0xe   :  { %33 = dma.hbm_to_vmem [thread:$0]  %s3526_s2, 8192, %s28_s28, [#allocation6], %s2421_s30, %s2421_s30, %s2422_s9  }
   0xf   :  { %s2423_s12 = smov [#allocation8]  }
  0x10   :  { %s41_s13 = sshll.u32 %s2423_s12, 4  ;;  %s42_s13 = int_to_ptr.vmem [resolvable:$true] %s41_s13 }
  0x11   :  { %s2340_s14 = scalar_lea.vmem %s42_s13, 2048  ;;  %p2345_p6 = scmp.lt.s32.totalorder %s42_s13, %s42_s13 }
  0x12   :  { %p2341_p5 = scmp.ne.s32.totalorder %s42_s13, %s2340_s14  ;;  %p2346_p7 = scmp.lt.s32.totalorder %s2340_s14, %s2340_s14 }
  0x14   :  { %p2347_p8 = por %p2346_p7, %p2345_p6 }
  0x16   :  { %p2348_p9 = pnand %p2347_p8, %p2341_p5 }
  0x18   :  { %2351 = shalt.err (!%p2348_p9)
}
  0x19   :  { %s2424_s15 = smov 128   ;;  %s2425_s16 = smov 8  }
  0x1a   :  { %47 = dma.hbm_to_vmem [thread:$0]  %s3528_s4, 2048, %s42_s13, [#allocation9], %s2424_s15, %s2424_s15, %s2425_s16  }
  0x1b   :  { %2412 = dma.done.wait [#allocation6], 8192  }
  0x1c   :  { %2413 = vsyncadd [#allocation6], 4294959104 }
  0x1d   :  { %2414 = dma.done.wait [#allocation9], 2048  }
  0x1e   :  { %2415 = vsyncadd [#allocation9], 4294965248  ;;  %v3533_v0 = vmov 0.0   ;;  %v75_v1 = vld [vmem:[%s3525_s1 + $0x28] sm:$0xff]  ;;  %v77_v2 = vld [vmem:[%s3525_s1 + $0x38] sm:$0xff]  ;;  %vm100_vm0 = vcmask 130048  }
  0x1f   :  { %189 = vmatprep.mubr.f32.mxu0 %v3533_v0  ;;  %302 = vmatprep.mubr.f32.mxu1 %v3533_v0  ;;  %v74_v3 = vld [vmem:[%s3525_s1 + $0x20] sm:$0xff]  ;;  %v76_v4 = vld [vmem:[%s3525_s1 + $0x30] sm:$0xff]  ;;  %v71_v5 = vld [vmem:[%s3525_s1 + $0x8] sm:$0xff]  ;;  %vm2427_vm1 = vmmov 0  }
  0x20   :  { %153 = vmatprep.subr.mxu0 %v75_v1  ;;  %266 = vmatprep.subr.mxu1 %v77_v2  ;;  %v73_v6 = vld [vmem:[%s3525_s1 + $0x18] sm:$0xff]  ;;  %v70_v7 = vld [vmem:[%s3525_s1] sm:$0xff]  ;;  %v72_v8 = vld [vmem:[%s3525_s1 + $0x10] sm:$0xff] }
  0x21   :  { %154 = vmatpush1.msra.mxu0 %v74_v3  ;;  %267 = vmatpush1.msra.mxu1 %v76_v4  ;;  %v62_v9 = vld [vmem:[%s3524_s0] sm:$0xff]  ;;  %v2511_v10 = vld [vmem:[#allocation5 + $0x1e8] sm:$0xff]  ;;  %v2513_v11 = vld [vmem:[#allocation5 + $0x1f8] sm:$0xff] }
  0x22   :  { %155 = vmatprep.subr.mxu0 %v71_v5  ;;  %268 = vmatprep.subr.mxu1 %v73_v6  ;;  %3621 = vst [vmem:[#allocation18_spill] sm:$0xff] %v2511_v10  ;;  %3622 = vst [vmem:[#allocation19_spill] sm:$0xff] %v2513_v11  ;;  %v2515_v12 = vld [vmem:[#allocation5 + $0x1e0] sm:$0xff]  ;;  %v2517_v13 = vld [vmem:[#allocation5 + $0x1f0] sm:$0xff] }
  0x23   :  { %156 = vmatpush1.msra.mxu0 %v70_v7  ;;  %269 = vmatpush1.msra.mxu1 %v72_v8  ;;  %v2521_v14 = vld [vmem:[#allocation5 + $0x1c8] sm:$0xff]  ;;  %v2523_v15 = vld [vmem:[#allocation5 + $0x1d8] sm:$0xff]  ;;  %v2529_v16 = vld [vmem:[#allocation5 + $0x1c0] sm:$0xff] }
  0x24   :  { %2016 = vmatmul.mubr.msk.f32.vlgmr.msra.gmra.mxu0 %vm100_vm0, %v62_v9  ;;  %2024 = vmatmul.mubr.msk.f32.vlgmr.msra.gmra.mxu1 %vm100_vm0, %v62_v9  ;;  %v2531_v17 = vld [vmem:[#allocation5 + $0x1d0] sm:$0xff]  ;;  %v63_v18 = vld [vmem:[%s3524_s0 + $0x8] sm:$0xff]  ;;  %v2542_v20 = vld [vmem:[#allocation5 + $0x1b8] sm:$0xff] }
  0x25   :  { %456 = vmatprep.subr.mxu0 %v2511_v10  ;;  %527 = vmatprep.subr.mxu1 %v2513_v11  ;;  %v2540_v19 = vld [vmem:[#allocation5 + $0x1a8] sm:$0xff]  ;;  %v2546_v21 = vld [vmem:[#allocation5 + $0x1a0] sm:$0xff]  ;;  %v2548_v22 = vld [vmem:[#allocation5 + $0x1b0] sm:$0xff] }
  0x26   :  { %457 = vmatpush1.msra.mxu0 %v2515_v12  ;;  %528 = vmatpush1.msra.mxu1 %v2517_v13  ;;  %v2552_v23 = vld [vmem:[#allocation5 + $0x188] sm:$0xff]  ;;  %v2554_v24 = vld [vmem:[#allocation5 + $0x198] sm:$0xff]  ;;  %v2560_v25 = vld [vmem:[#allocation5 + $0x180] sm:$0xff] }
  0x27   :  { %458 = vmatprep.subr.mxu0 %v2521_v14  ;;  %529 = vmatprep.subr.mxu1 %v2523_v15  ;;  %v2562_v26 = vld [vmem:[#allocation5 + $0x190] sm:$0xff]  ;;  %v2571_v28 = vld [vmem:[#allocation5 + $0x168] sm:$0xff]  ;;  %v2573_v29 = vld [vmem:[#allocation5 + $0x178] sm:$0xff] }
  0x28   :  { %195 = vmatprep.mubr.f32.mxu0 %v3533_v0  ;;  %308 = vmatprep.mubr.f32.mxu1 %v3533_v0  ;;  %v64_v27 = vld [vmem:[%s3524_s0 + $0x10] sm:$0xff]  ;;  %v2577_v30 = vld [vmem:[#allocation5 + $0x160] sm:$0xff]  ;;  %v2583_v32 = vld [vmem:[#allocation5 + $0x148] sm:$0xff] }
  0x29   :  { %459 = vmatpush1.msra.mxu0 %v2529_v16  ;;  %530 = vmatpush1.msra.mxu1 %v2531_v17  ;;  %v2579_v31 = vld [vmem:[#allocation5 + $0x170] sm:$0xff]  ;;  %v2585_v33 = vld [vmem:[#allocation5 + $0x158] sm:$0xff]  ;;  %v2591_v34 = vld [vmem:[#allocation5 + $0x140] sm:$0xff] }
  0x2a   :  { %2017 = vmatmul.mubr.msk.f32.gmra.mxu0 %vm100_vm0, %v63_v18  ;;  %2025 = vmatmul.mubr.msk.f32.gmra.mxu1 %vm100_vm0, %v63_v18  ;;  %v2593_v35 = vld [vmem:[#allocation5 + $0x150] sm:$0xff]  ;;  %v65_v36 = vld [vmem:[%s3524_s0 + $0x18] sm:$0xff]  ;;  %v2602_v37 = vld [vmem:[#allocation5 + $0x128] sm:$0xff] }
  0x2b   :  { %460 = vmatprep.subr.mxu0 %v2540_v19  ;;  %531 = vmatprep.subr.mxu1 %v2542_v20  ;;  %v2604_v38 = vld [vmem:[#allocation5 + $0x138] sm:$0xff]  ;;  %v2608_v39 = vld [vmem:[#allocation5 + $0x120] sm:$0xff]  ;;  %v2610_v40 = vld [vmem:[#allocation5 + $0x130] sm:$0xff] }
  0x2c   :  { %461 = vmatpush1.msra.mxu0 %v2546_v21  ;;  %532 = vmatpush1.msra.mxu1 %v2548_v22  ;;  %v2614_v41 = vld [vmem:[#allocation5 + $0x108] sm:$0xff]  ;;  %v2616_v42 = vld [vmem:[#allocation5 + $0x118] sm:$0xff]  ;;  %v2622_v43 = vld [vmem:[#allocation5 + $0x100] sm:$0xff] }
  0x2d   :  { %462 = vmatprep.subr.mxu0 %v2552_v23  ;;  %533 = vmatprep.subr.mxu1 %v2554_v24  ;;  %v2624_v44 = vld [vmem:[#allocation5 + $0x110] sm:$0xff]  ;;  %v66_v45 = vld [vmem:[%s3524_s0 + $0x20] sm:$0xff]  ;;  %v2633_v46 = vld [vmem:[#allocation5 + $0xe8] sm:$0xff] }
  0x2e   :  { %201 = vmatprep.mubr.f32.mxu0 %v3533_v0  ;;  %314 = vmatprep.mubr.f32.mxu1 %v3533_v0  ;;  %v2635_v47 = vld [vmem:[#allocation5 + $0xf8] sm:$0xff]  ;;  %v2639_v48 = vld [vmem:[#allocation5 + $0xe0] sm:$0xff]  ;;  %v2641_v49 = vld [vmem:[#allocation5 + $0xf0] sm:$0xff] }
  0x2f   :  { %463 = vmatpush1.msra.mxu0 %v2560_v25  ;;  %534 = vmatpush1.msra.mxu1 %v2562_v26  ;;  %v2645_v50 = vld [vmem:[#allocation5 + $0xc8] sm:$0xff]  ;;  %v2647_v51 = vld [vmem:[#allocation5 + $0xd8] sm:$0xff]  ;;  %v2653_v52 = vld [vmem:[#allocation5 + $0xc0] sm:$0xff] }
  0x30   :  { %2018 = vmatmul.mubr.msk.f32.gmra.mxu0 %vm100_vm0, %v64_v27  ;;  %2026 = vmatmul.mubr.msk.f32.gmra.mxu1 %vm100_vm0, %v64_v27  ;;  %v2655_v53 = vld [vmem:[#allocation5 + $0xd0] sm:$0xff]  ;;  %v67_v54 = vld [vmem:[%s3524_s0 + $0x28] sm:$0xff]  ;;  %v2666_v56 = vld [vmem:[#allocation5 + $0xb8] sm:$0xff] }
  0x31   :  { %464 = vmatprep.subr.mxu0 %v2571_v28  ;;  %535 = vmatprep.subr.mxu1 %v2573_v29  ;;  %v2664_v55 = vld [vmem:[#allocation5 + $0xa8] sm:$0xff]  ;;  %v2670_v57 = vld [vmem:[#allocation5 + $0xa0] sm:$0xff]  ;;  %v2672_v58 = vld [vmem:[#allocation5 + $0xb0] sm:$0xff] }
  0x32   :  { %465 = vmatpush1.msra.mxu0 %v2577_v30  ;;  %536 = vmatpush1.msra.mxu1 %v2579_v31  ;;  %v2676_v59 = vld [vmem:[#allocation5 + $0x88] sm:$0xff]  ;;  %v2678_v60 = vld [vmem:[#allocation5 + $0x98] sm:$0xff]  ;;  %v2684_v61 = vld [vmem:[#allocation5 + $0x80] sm:$0xff] }
  0x33   :  { %466 = vmatprep.subr.mxu0 %v2583_v32  ;;  %537 = vmatprep.subr.mxu1 %v2585_v33  ;;  %3623 = vst [vmem:[#allocation20_spill] sm:$0xff] %v2676_v59  ;;  %3624 = vst [vmem:[#allocation21_spill] sm:$0xff] %v2678_v60  ;;  %v2686_v62 = vld [vmem:[#allocation5 + $0x90] sm:$0xff]  ;;  %v2695_v1 = vld [vmem:[#allocation5 + $0x68] sm:$0xff] }
  0x34   :  { %207 = vmatprep.mubr.f32.mxu0 %v3533_v0  ;;  %320 = vmatprep.mubr.f32.mxu1 %v3533_v0  ;;  %3625 = vst [vmem:[#allocation22_spill] sm:$0xff] %v2684_v61  ;;  %3626 = vst [vmem:[#allocation23_spill] sm:$0xff] %v2686_v62  ;;  %v68_v63 = vld [vmem:[%s3524_s0 + $0x30] sm:$0xff]  ;;  %v2697_v2 = vld [vmem:[#allocation5 + $0x78] sm:$0xff] }
  0x35   :  { %467 = vmatpush1.msra.mxu0 %v2591_v34  ;;  %538 = vmatpush1.msra.mxu1 %v2593_v35  ;;  %3627 = vst [vmem:[#allocation24_spill] sm:$0xff] %v2695_v1  ;;  %3628 = vst [vmem:[#allocation25_spill] sm:$0xff] %v2697_v2  ;;  %v2701_v3 = vld [vmem:[#allocation5 + $0x60] sm:$0xff]  ;;  %v2703_v4 = vld [vmem:[#allocation5 + $0x70] sm:$0xff] }
  0x36   :  { %2019 = vmatmul.mubr.msk.f32.gmra.mxu0 %vm100_vm0, %v65_v36  ;;  %2027 = vmatmul.mubr.msk.f32.gmra.mxu1 %vm100_vm0, %v65_v36  ;;  %3629 = vst [vmem:[#allocation26_spill] sm:$0xff] %v2701_v3  ;;  %3630 = vst [vmem:[#allocation27_spill] sm:$0xff] %v2703_v4  ;;  %v2707_v5 = vld [vmem:[#allocation5 + $0x48] sm:$0xff]  ;;  %v2709_v6 = vld [vmem:[#allocation5 + $0x58] sm:$0xff] }
  0x37   :  { %468 = vmatprep.subr.mxu0 %v2602_v37  ;;  %539 = vmatprep.subr.mxu1 %v2604_v38  ;;  %3631 = vst [vmem:[#allocation28_spill] sm:$0xff] %v2707_v5  ;;  %3632 = vst [vmem:[#allocation29_spill] sm:$0xff] %v2709_v6  ;;  %v2715_v7 = vld [vmem:[#allocation5 + $0x40] sm:$0xff]  ;;  %v2717_v8 = vld [vmem:[#allocation5 + $0x50] sm:$0xff] }
  0x38   :  { %469 = vmatpush1.msra.mxu0 %v2608_v39  ;;  %540 = vmatpush1.msra.mxu1 %v2610_v40  ;;  %3633 = vst [vmem:[#allocation30_spill] sm:$0xff] %v2715_v7  ;;  %3634 = vst [vmem:[#allocation31_spill] sm:$0xff] %v2717_v8  ;;  %v69_v9 = vld [vmem:[%s3524_s0 + $0x38] sm:$0xff]  ;;  %v2726_v18 = vld [vmem:[#allocation5 + $0x28] sm:$0xff] }
  0x39   :  { %470 = vmatprep.subr.mxu0 %v2614_v41  ;;  %541 = vmatprep.subr.mxu1 %v2616_v42  ;;  %3635 = vst [vmem:[#allocation32_spill] sm:$0xff] %v2726_v18  ;;  %v2728_v27 = vld [vmem:[#allocation5 + $0x38] sm:$0xff]  ;;  %v2732_v36 = vld [vmem:[#allocation5 + $0x20] sm:$0xff] }
  0x3a   :  { %213 = vmatprep.mubr.f32.mxu0 %v3533_v0  ;;  %326 = vmatprep.mubr.f32.mxu1 %v3533_v0  ;;  %3636 = vst [vmem:[#allocation33_spill] sm:$0xff] %v2728_v27  ;;  %3637 = vst [vmem:[#allocation34_spill] sm:$0xff] %v2732_v36 }
  0x3b   :  { %471 = vmatpush1.msra.mxu0 %v2622_v43  ;;  %542 = vmatpush1.msra.mxu1 %v2624_v44 }
  0x3c   :  { %2020 = vmatmul.mubr.msk.f32.gmra.mxu0 %vm100_vm0, %v66_v45  ;;  %2028 = vmatmul.mubr.msk.f32.gmra.mxu1 %vm100_vm0, %v66_v45  ;;  %v2734_v45 = vld [vmem:[#allocation5 + $0x30] sm:$0xff] }
  0x3d   :  { %472 = vmatprep.subr.mxu0 %v2633_v46  ;;  %543 = vmatprep.subr.mxu1 %v2635_v47  ;;  %3638 = vst [vmem:[#allocation35_spill] sm:$0xff] %v2734_v45 }
  0x3e   :  { %473 = vmatpush1.msra.mxu0 %v2639_v48  ;;  %544 = vmatpush1.msra.mxu1 %v2641_v49 }
  0x3f   :  { %474 = vmatprep.subr.mxu0 %v2645_v50  ;;  %545 = vmatprep.subr.mxu1 %v2647_v51 }
  0x40   :  { %219 = vmatprep.mubr.f32.mxu0 %v3533_v0  ;;  %332 = vmatprep.mubr.f32.mxu1 %v3533_v0 }
  0x41   :  { %475 = vmatpush1.msra.mxu0 %v2653_v52  ;;  %546 = vmatpush1.msra.mxu1 %v2655_v53 }
  0x42   :  { %2021 = vmatmul.mubr.msk.f32.gmra.mxu0 %vm100_vm0, %v67_v54  ;;  %2029 = vmatmul.mubr.msk.f32.gmra.mxu1 %vm100_vm0, %v67_v54  ;;  %v2738_v54 = vld [vmem:[#allocation5 + $0x8] sm:$0xff] }
  0x43   :  { %476 = vmatprep.subr.mxu0 %v2664_v55  ;;  %547 = vmatprep.subr.mxu1 %v2666_v56  ;;  %3639 = vst [vmem:[#allocation36_spill] sm:$0xff] %v2738_v54 }
  0x44   :  { %477 = vmatpush1.msra.mxu0 %v2670_v57  ;;  %548 = vmatpush1.msra.mxu1 %v2672_v58 }
  0x45   :  { %478 = vmatprep.subr.mxu0 %v2676_v59  ;;  %549 = vmatprep.subr.mxu1 %v2678_v60 }
  0x46   :  { %225 = vmatprep.mubr.f32.mxu0 %v3533_v0  ;;  %338 = vmatprep.mubr.f32.mxu1 %v3533_v0 }
  0x47   :  { %479 = vmatpush1.msra.mxu0 %v2684_v61  ;;  %550 = vmatpush1.msra.mxu1 %v2686_v62 }
  0x48   :  { %2022 = vmatmul.mubr.msk.f32.gmra.mxu0 %vm100_vm0, %v68_v63  ;;  %2030 = vmatmul.mubr.msk.f32.gmra.mxu1 %vm100_vm0, %v68_v63  ;;  %v2740_v63 = vld [vmem:[#allocation5 + $0x18] sm:$0xff] }
  0x49   :  { %480 = vmatprep.subr.mxu0 %v2695_v1  ;;  %551 = vmatprep.subr.mxu1 %v2697_v2  ;;  %3640 = vst [vmem:[#allocation37_spill] sm:$0xff] %v2740_v63 }
  0x4a   :  { %481 = vmatpush1.msra.mxu0 %v2701_v3  ;;  %552 = vmatpush1.msra.mxu1 %v2703_v4 }
  0x4b   :  { %482 = vmatprep.subr.mxu0 %v2707_v5  ;;  %553 = vmatprep.subr.mxu1 %v2709_v6 }
  0x4c   :  { %231 = vmatprep.mubr.f32.mxu0 %v3533_v0  ;;  %344 = vmatprep.mubr.f32.mxu1 %v3533_v0  ;;  %v2744_v0 = vld [vmem:[#allocation5] sm:$0xff] }
  0x4d   :  { %483 = vmatpush1.msra.mxu0 %v2715_v7  ;;  %554 = vmatpush1.msra.mxu1 %v2717_v8  ;;  %3641 = vst [vmem:[#allocation38_spill] sm:$0xff] %v2744_v0  ;;  %v2748_v8 = vld [vmem:[#allocation5 + $0x10] sm:$0xff] }
  0x4e   :  { %2023 = vmatmul.mubr.msk.f32.gmra.mxu0 %vm100_vm0, %v69_v9  ;;  %2031 = vmatmul.mubr.msk.f32.gmra.mxu1 %vm100_vm0, %v69_v9  ;;  %3642 = vst [vmem:[#allocation39_spill] sm:$0xff] %v2748_v8  ;;  %v3643_v9 = vmov 0.0  }
  0x4f   :  { %484 = vmatprep.subr.mxu0 %v2726_v18  ;;  %555 = vmatprep.subr.mxu1 %v2728_v27 }
  0x50   :  { %485 = vmatpush1.msra.mxu0 %v2732_v36  ;;  %556 = vmatpush1.msra.mxu1 %v2734_v45 }
  0x51   :  { %486 = vmatprep.subr.mxu0 %v2738_v54  ;;  %557 = vmatprep.subr.mxu1 %v2740_v63 }
  0x52   :  { %487 = vmatpush1.msra.mxu0 %v2744_v0  ;;  %520 = vmatprep.mubr.f32.mxu0 %v3643_v9 }
  0x53   :  { %558 = vmatpush1.msra.mxu1 %v2748_v8  ;;  %591 = vmatprep.mubr.f32.mxu1 %v3643_v9 }
  0x54   :  { %521 = vmatmul.mubr.f32.vlgmr.msra.gmra.mxu0 %v3643_v9  ;;  %592 = vmatmul.mubr.f32.vlgmr.msra.gmra.mxu1 %v3643_v9 }
  0x55   :  { %633 = vmatprep.subr.mxu0 %v2511_v10  ;;  %704 = vmatprep.subr.mxu1 %v2513_v11 }
  0x56   :  { %634 = vmatpush1.msra.mxu0 %v2515_v12  ;;  %705 = vmatpush1.msra.mxu1 %v2517_v13 }
  0x57   :  { %635 = vmatprep.subr.mxu0 %v2521_v14  ;;  %706 = vmatprep.subr.mxu1 %v2523_v15 }
  0x58   :  { %636 = vmatpush1.msra.mxu0 %v2529_v16  ;;  %707 = vmatpush1.msra.mxu1 %v2531_v17 }
  0x59   :  { %637 = vmatprep.subr.mxu0 %v2540_v19  ;;  %708 = vmatprep.subr.mxu1 %v2542_v20 }
  0x5a   :  { %638 = vmatpush1.msra.mxu0 %v2546_v21  ;;  %709 = vmatpush1.msra.mxu1 %v2548_v22 }
  0x5b   :  { %639 = vmatprep.subr.mxu0 %v2552_v23  ;;  %710 = vmatprep.subr.mxu1 %v2554_v24 }
  0x5c   :  { %640 = vmatpush1.msra.mxu0 %v2560_v25  ;;  %711 = vmatpush1.msra.mxu1 %v2562_v26 }
  0x5d   :  { %641 = vmatprep.subr.mxu0 %v2571_v28  ;;  %712 = vmatprep.subr.mxu1 %v2573_v29 }
  0x5e   :  { %642 = vmatpush1.msra.mxu0 %v2577_v30  ;;  %713 = vmatpush1.msra.mxu1 %v2579_v31 }
  0x5f   :  { %643 = vmatprep.subr.mxu0 %v2583_v32  ;;  %714 = vmatprep.subr.mxu1 %v2585_v33 }
  0x60   :  { %644 = vmatpush1.msra.mxu0 %v2591_v34  ;;  %715 = vmatpush1.msra.mxu1 %v2593_v35 }
  0x61   :  { %645 = vmatprep.subr.mxu0 %v2602_v37  ;;  %716 = vmatprep.subr.mxu1 %v2604_v38 }
  0x62   :  { %646 = vmatpush1.msra.mxu0 %v2608_v39  ;;  %717 = vmatpush1.msra.mxu1 %v2610_v40 }
  0x63   :  { %647 = vmatprep.subr.mxu0 %v2614_v41  ;;  %718 = vmatprep.subr.mxu1 %v2616_v42 }
  0x64   :  { %648 = vmatpush1.msra.mxu0 %v2622_v43  ;;  %719 = vmatpush1.msra.mxu1 %v2624_v44 }
  0x65   :  { %649 = vmatprep.subr.mxu0 %v2633_v46  ;;  %720 = vmatprep.subr.mxu1 %v2635_v47 }
  0x66   :  { %650 = vmatpush1.msra.mxu0 %v2639_v48  ;;  %721 = vmatpush1.msra.mxu1 %v2641_v49 }
  0x67   :  { %651 = vmatprep.subr.mxu0 %v2645_v50  ;;  %722 = vmatprep.subr.mxu1 %v2647_v51 }
  0x68   :  { %652 = vmatpush1.msra.mxu0 %v2653_v52  ;;  %723 = vmatpush1.msra.mxu1 %v2655_v53 }
  0x69   :  { %653 = vmatprep.subr.mxu0 %v2664_v55  ;;  %724 = vmatprep.subr.mxu1 %v2666_v56 }
  0x6a   :  { %654 = vmatpush1.msra.mxu0 %v2670_v57  ;;  %725 = vmatpush1.msra.mxu1 %v2672_v58 }
  0x6b   :  { %655 = vmatprep.subr.mxu0 %v2676_v59  ;;  %726 = vmatprep.subr.mxu1 %v2678_v60  ;;  %v3644_v59 = vld [vmem:[#allocation31_spill] sm:$0xff] }
  0x6c   :  { %656 = vmatpush1.msra.mxu0 %v2684_v61  ;;  %727 = vmatpush1.msra.mxu1 %v2686_v62 }
  0x6d   :  { %657 = vmatprep.subr.mxu0 %v2695_v1  ;;  %728 = vmatprep.subr.mxu1 %v2697_v2 }
  0x6e   :  { %658 = vmatpush1.msra.mxu0 %v2701_v3  ;;  %729 = vmatpush1.msra.mxu1 %v2703_v4 }
  0x6f   :  { %659 = vmatprep.subr.mxu0 %v2707_v5  ;;  %730 = vmatprep.subr.mxu1 %v2709_v6 }
  0x70   :  { %660 = vmatpush1.msra.mxu0 %v2715_v7  ;;  %731 = vmatpush1.msra.mxu1 %v3644_v59 }
  0x71   :  { %661 = vmatprep.subr.mxu0 %v2726_v18  ;;  %732 = vmatprep.subr.mxu1 %v2728_v27  ;;  %v80_v27 = vlaneseq }
  0x72   :  { %662 = vmatpush1.msra.mxu0 %v2732_v36  ;;  %733 = vmatpush1.msra.mxu1 %v2734_v45 }
  0x73   :  { %663 = vmatprep.subr.mxu0 %v2738_v54  ;;  %734 = vmatprep.subr.mxu1 %v2740_v63  ;;  %v81_v36 = vshrl.u32 %v80_v27, 7 }
  0x74   :  { %664 = vmatpush1.msra.mxu0 %v2744_v0  ;;  %697 = vmatprep.mubr.f32.mxu0 %v3643_v9  ;;  %v78_v0 = vld [vmem:[%s3527_s3] sm:$0xf]  ;;  %s2428_s3 = smov [#allocation11]  }
  0x75   :  { %735 = vmatpush1.msra.mxu1 %v2748_v8  ;;  %768 = vmatprep.mubr.f32.mxu1 %v3643_v9  ;;  %v82_v54 = vsub.s32 0, %v81_v36  ;;  %v90_v63 = vsub.s32 2, %v81_v36  ;;  %v86_v9 = vsub.s32 1, %v81_v36  ;;  %s1982_s25 = sshll.u32 %s2428_s3, 4  ;;  %s1983_s25 = int_to_ptr.vmem [resolvable:$true] %s1982_s25 }
  0x76   :  { %810 = vmatprep.subr.mxu0 %v2511_v10  ;;  %881 = vmatprep.subr.mxu1 %v2513_v11  ;;  %v94_v10 = vsub.s32 3, %v81_v36  ;;  %s2352_s26 = scalar_lea.vmem %s1983_s25, 128  ;;  %p2357_p11 = scmp.lt.s32.totalorder %s1983_s25, %s1983_s25 }
  0x77   :  { %v83_v7 = vrot.slane %v78_v0, %v82_v54  ;;  %v2837_v11 = vrot.slane %v78_v0, %v90_v63  ;;  %v87_v5 = vrot.slane %v78_v0, %v86_v9  ;;  %p2353_p10 = scmp.ne.s32.totalorder %s1983_s25, %s2352_s26  ;;  %p2358_p12 = scmp.lt.s32.totalorder %s2352_s26, %s2352_s26 }
  0x78   :  { %v2839_v4 = vrot.slane %v78_v0, %v94_v10 }
  0x79   :  { %p2359_p13 = por %p2358_p12, %p2357_p11 }
  0x7b   :  { %p2360_p0 = pnand %p2359_p13, %p2353_p10 }
  0xe4   :  { %v2826_v18 = vpop.f32.mrf.mxu0  ;;  %v2828_v45 = vpop.f32.mrf.mxu1 }
  0xe6   :  { %v2833_v59 = vpop.f32.mrf.mxu0  ;;  %v2835_v8 = vpop.f32.mrf.mxu1 }
  0xea   :  { %v197_v27 = vpop.f32.mrf.mxu0  ;;  %v310_v6 = vpop.f32.mrf.mxu1 }
  0xeb   :  { %v2841_v3 = vadd.f32 %v197_v27, %v83_v7  ;;  %v2844_v2 = vadd.f32 %v310_v6, %v2837_v11 }
  0xec   :  { %v199_v1 = vpop.f32.mrf.mxu0  ;;  %v312_v62 = vpop.f32.mrf.mxu1 }
  0xed   :  { %3645 = vst [vmem:[#allocation40_spill] sm:$0xff] %v2841_v3  ;;  %3646 = vst [vmem:[#allocation41_spill] sm:$0xff] %v2844_v2  ;;  %v2846_v61 = vadd.f32 %v199_v1, %v87_v5  ;;  %v2849_v60 = vadd.f32 %v312_v62, %v2839_v4 }
  0xef   :  { %3647 = vst [vmem:[#allocation42_spill] sm:$0xff] %v2846_v61  ;;  %3648 = vst [vmem:[#allocation43_spill] sm:$0xff] %v2849_v60 }
  0xf0   :  { %v203_v36 = vpop.f32.mrf.mxu0  ;;  %v316_v54 = vpop.f32.mrf.mxu1 }
  0xf1   :  { %v2851_v63 = vadd.f32 %v203_v36, %v83_v7  ;;  %v2854_v9 = vadd.f32 %v316_v54, %v2837_v11 }
  0xf2   :  { %v205_v0 = vpop.f32.mrf.mxu0  ;;  %v318_v10 = vpop.f32.mrf.mxu1 }
  0xf3   :  { %3649 = vst [vmem:[#allocation44_spill] sm:$0xff] %v2851_v63  ;;  %3650 = vst [vmem:[#allocation45_spill] sm:$0xff] %v2854_v9  ;;  %v2856_v27 = vadd.f32 %v205_v0, %v87_v5  ;;  %v2859_v6 = vadd.f32 %v318_v10, %v2839_v4 }
  0xf5   :  { %3651 = vst [vmem:[#allocation46_spill] sm:$0xff] %v2856_v27  ;;  %3652 = vst [vmem:[#allocation47_spill] sm:$0xff] %v2859_v6 }
  0xf6   :  { %v209_v2 = vpop.f32.mrf.mxu0  ;;  %v322_v1 = vpop.f32.mrf.mxu1 }
  0xf7   :  { %v2861_v61 = vadd.f32 %v209_v2, %v83_v7  ;;  %v2864_v62 = vadd.f32 %v322_v1, %v2837_v11 }
  0xf8   :  { %v211_v60 = vpop.f32.mrf.mxu0  ;;  %v324_v36 = vpop.f32.mrf.mxu1 }
  0xf9   :  { %3653 = vst [vmem:[#allocation48_spill] sm:$0xff] %v2861_v61  ;;  %3654 = vst [vmem:[#allocation49_spill] sm:$0xff] %v2864_v62  ;;  %v2866_v63 = vadd.f32 %v211_v60, %v87_v5  ;;  %v2869_v54 = vadd.f32 %v324_v36, %v2839_v4 }
  0xfb   :  { %3655 = vst [vmem:[#allocation50_spill] sm:$0xff] %v2866_v63  ;;  %3656 = vst [vmem:[#allocation51_spill] sm:$0xff] %v2869_v54 }
  0xfc   :  { %v215_v9 = vpop.f32.mrf.mxu0  ;;  %v328_v0 = vpop.f32.mrf.mxu1 }
  0xfd   :  { %v2871_v27 = vadd.f32 %v215_v9, %v83_v7  ;;  %v2874_v10 = vadd.f32 %v328_v0, %v2837_v11 }
  0xfe   :  { %v217_v6 = vpop.f32.mrf.mxu0  ;;  %v330_v2 = vpop.f32.mrf.mxu1 }
  0xff   :  { %3657 = vst [vmem:[#allocation52_spill] sm:$0xff] %v2871_v27  ;;  %3658 = vst [vmem:[#allocation53_spill] sm:$0xff] %v2874_v10  ;;  %v2876_v61 = vadd.f32 %v217_v6, %v87_v5  ;;  %v2879_v1 = vadd.f32 %v330_v2, %v2839_v4 }
 0x101   :  { %3659 = vst [vmem:[#allocation54_spill] sm:$0xff] %v2876_v61  ;;  %3660 = vst [vmem:[#allocation55_spill] sm:$0xff] %v2879_v1 }
 0x102   :  { %v221_v62 = vpop.f32.mrf.mxu0  ;;  %v334_v60 = vpop.f32.mrf.mxu1 }
 0x103   :  { %v2881_v63 = vadd.f32 %v221_v62, %v83_v7  ;;  %v2884_v36 = vadd.f32 %v334_v60, %v2837_v11 }
 0x104   :  { %v223_v54 = vpop.f32.mrf.mxu0  ;;  %v336_v9 = vpop.f32.mrf.mxu1 }
 0x105   :  { %3661 = vst [vmem:[#allocation56_spill] sm:$0xff] %v2881_v63  ;;  %3662 = vst [vmem:[#allocation57_spill] sm:$0xff] %v2884_v36  ;;  %v2886_v27 = vadd.f32 %v223_v54, %v87_v5  ;;  %v2889_v0 = vadd.f32 %v336_v9, %v2839_v4 }
 0x107   :  { %3663 = vst [vmem:[#allocation58_spill] sm:$0xff] %v2886_v27  ;;  %3664 = vst [vmem:[#allocation59_spill] sm:$0xff] %v2889_v0 }
 0x108   :  { %v227_v10 = vpop.f32.mrf.mxu0  ;;  %v340_v6 = vpop.f32.mrf.mxu1 }
 0x109   :  { %v2891_v61 = vadd.f32 %v227_v10, %v83_v7  ;;  %v2894_v2 = vadd.f32 %v340_v6, %v2837_v11 }
 0x10a   :  { %v229_v1 = vpop.f32.mrf.mxu0  ;;  %v342_v62 = vpop.f32.mrf.mxu1 }
 0x10b   :  { %3665 = vst [vmem:[#allocation60_spill] sm:$0xff] %v2891_v61  ;;  %3666 = vst [vmem:[#allocation61_spill] sm:$0xff] %v2894_v2  ;;  %v2896_v63 = vadd.f32 %v229_v1, %v87_v5  ;;  %v2899_v60 = vadd.f32 %v342_v62, %v2839_v4  ;;  %v192_v1 = vadd.f32 %v2826_v18, %v83_v7 }
 0x10c   :  { %v194_v62 = vadd.f32 %v2833_v59, %v87_v5 }
 0x10d   :  { %3667 = vst [vmem:[#allocation62_spill] sm:$0xff] %v2896_v63  ;;  %3668 = vst [vmem:[#allocation63_spill] sm:$0xff] %v2899_v60 }
 0x10e   :  { %v233_v36 = vpop.f32.mrf.mxu0  ;;  %v346_v54 = vpop.f32.mrf.mxu1 }
 0x10f   :  { %v2901_v27 = vadd.f32 %v233_v36, %v83_v7  ;;  %v2904_v9 = vadd.f32 %v346_v54, %v2837_v11 }
 0x110   :  { %v235_v0 = vpop.f32.mrf.mxu0  ;;  %v348_v10 = vpop.f32.mrf.mxu1 }
 0x111   :  { %3669 = vst [vmem:[#allocation64_spill] sm:$0xff] %v2901_v27  ;;  %3670 = vst [vmem:[#allocation65_spill] sm:$0xff] %v2904_v9  ;;  %v2906_v61 = vadd.f32 %v235_v0, %v87_v5  ;;  %v2909_v6 = vadd.f32 %v348_v10, %v2839_v4  ;;  %v307_v0 = vadd.f32 %v2835_v8, %v2839_v4 }
 0x112   :  { %v305_v10 = vadd.f32 %v2828_v45, %v2837_v11 }
 0x113   :  { %3671 = vst [vmem:[#allocation66_spill] sm:$0xff] %v2906_v61  ;;  %3672 = vst [vmem:[#allocation67_spill] sm:$0xff] %v2909_v6 }
 0x114   :  { %v522_v2 = vpop.f32.mrf.mxu0  ;;  %v593_v27 = vpop.f32.mrf.mxu1 }
 0x115   :  { %v598_v60 = vadd.f32 %v522_v2, %v192_v1  ;;  %v600_v6 = vadd.f32 %v593_v27, %v305_v10  ;;  %v3673_v27 = vld [vmem:[#allocation20_spill] sm:$0xff]  ;;  %v3678_v10 = vld [vmem:[#allocation25_spill] sm:$0xff] }
 0x116   :  { %v524_v63 = vpop.f32.mrf.mxu0  ;;  %v595_v9 = vpop.f32.mrf.mxu1 }
 0x117   :  { %v2032_v3 = vmul.f32 -1.442695, %v598_v60  ;;  %v599_v36 = vadd.f32 %v524_v63, %v194_v62  ;;  %v601_v61 = vadd.f32 %v595_v9, %v307_v0  ;;  %v3677_v0 = vld [vmem:[#allocation24_spill] sm:$0xff] }
 0x119   :  { %2120 = vpow2.f32 %v2032_v3  ;;  %v2033_v54 = vmul.f32 -1.442695, %v599_v36  ;;  %v2034_v7 = vmul.f32 -1.442695, %v601_v61  ;;  %v3675_v36 = vld [vmem:[#allocation22_spill] sm:$0xff] }
 0x11b   :  { %2122 = vpow2.f32 %v2033_v54  ;;  %v3676_v54 = vld [vmem:[#allocation23_spill] sm:$0xff] }
 0x11c   :  { %2124 = vpow2.f32 %v2034_v7  ;;  %v3679_v7 = vld [vmem:[#allocation26_spill] sm:$0xff] }
 0x126   :  { %v2121_v18 = vpop.eup %2120 }
 0x127   :  { %v605_v59 = vadd.f32 1.0, %v2121_v18  ;;  %v3680_v18 = vld [vmem:[#allocation27_spill] sm:$0xff] }
 0x128   :  { %v2123_v5 = vpop.eup %2122 }
 0x129   :  { %2126 = vrcp.f32 %v605_v59  ;;  %v611_v63 = vadd.f32 1.0, %v2123_v5  ;;  %v2125_v3 = vpop.eup %2124  ;;  %v3681_v59 = vld [vmem:[#allocation28_spill] sm:$0xff]  ;;  %v3682_v5 = vld [vmem:[#allocation29_spill] sm:$0xff] }
 0x12a   :  { %2128 = vtanh.f32 %v600_v6  ;;  %v618_v62 = vadd.f32 1.0, %v2125_v3  ;;  %v3674_v6 = vld [vmem:[#allocation21_spill] sm:$0xff]  ;;  %v3684_v3 = vld [vmem:[#allocation31_spill] sm:$0xff] }
 0x12b   :  { %2130 = vrcp.f32 %v611_v63  ;;  %v3683_v63 = vld [vmem:[#allocation30_spill] sm:$0xff] }
 0x12c   :  { %2132 = vrcp.f32 %v618_v62  ;;  %v3688_v62 = vld [vmem:[#allocation35_spill] sm:$0xff] }
 0x136   :  { %v2127_v2 = vpop.eup %2126 }
 0x137   :  { %v2129_v60 = vpop.eup %2128 }
 0x138   :  { %v2131_v1 = vpop.eup %2130  ;;  %v622_v8 = vmul.f32 %v2129_v60, %v2127_v2  ;;  %v3685_v2 = vld [vmem:[#allocation32_spill] sm:$0xff]  ;;  %v3686_v60 = vld [vmem:[#allocation33_spill] sm:$0xff] }
 0x139   :  { %v621_v4 = vmul.f32 0.0, %v2131_v1  ;;  %v2133_v11 = vpop.eup %2132  ;;  %v3687_v1 = vld [vmem:[#allocation34_spill] sm:$0xff] }
 0x13b   :  { %v2917_v9 = vadd.f32 %v622_v8, %v621_v4  ;;  %v3689_v4 = vld [vmem:[#allocation36_spill] sm:$0xff]  ;;  %v3690_v8 = vld [vmem:[#allocation37_spill] sm:$0xff] }
 0x13d   :  { %2134 = vtanh.f32 %v2917_v9 }
 0x14a   :  { %v2135_v61 = vpop.eup %2134 }
 0x14b   :  { %v625_v45 = vmul.f32 %v2135_v61, %v2133_v11  ;;  %v3691_v11 = vld [vmem:[#allocation38_spill] sm:$0xff]  ;;  %v3692_v61 = vmov 0.0  }
 0x14d   :  { %698 = vmatmul.mubr.f32.vlgmr.msra.gmra.mxu0 %v625_v45  ;;  %769 = vmatmul.mubr.f32.vlgmr.msra.gmra.mxu1 %v625_v45  ;;  %v3693_v45 = vld [vmem:[#allocation39_spill] sm:$0xff] }
 0x14e   :  { %811 = vmatpush1.msra.mxu0 %v2515_v12  ;;  %882 = vmatpush1.msra.mxu1 %v2517_v13 }
 0x14f   :  { %812 = vmatprep.subr.mxu0 %v2521_v14  ;;  %883 = vmatprep.subr.mxu1 %v2523_v15 }
 0x150   :  { %813 = vmatpush1.msra.mxu0 %v2529_v16  ;;  %884 = vmatpush1.msra.mxu1 %v2531_v17 }
 0x151   :  { %814 = vmatprep.subr.mxu0 %v2540_v19  ;;  %885 = vmatprep.subr.mxu1 %v2542_v20 }
 0x152   :  { %815 = vmatpush1.msra.mxu0 %v2546_v21  ;;  %886 = vmatpush1.msra.mxu1 %v2548_v22 }
 0x153   :  { %816 = vmatprep.subr.mxu0 %v2552_v23  ;;  %887 = vmatprep.subr.mxu1 %v2554_v24 }
 0x154   :  { %817 = vmatpush1.msra.mxu0 %v2560_v25  ;;  %888 = vmatpush1.msra.mxu1 %v2562_v26 }
 0x155   :  { %818 = vmatprep.subr.mxu0 %v2571_v28  ;;  %889 = vmatprep.subr.mxu1 %v2573_v29 }
 0x156   :  { %819 = vmatpush1.msra.mxu0 %v2577_v30  ;;  %890 = vmatpush1.msra.mxu1 %v2579_v31 }
 0x157   :  { %820 = vmatprep.subr.mxu0 %v2583_v32  ;;  %891 = vmatprep.subr.mxu1 %v2585_v33 }
 0x158   :  { %821 = vmatpush1.msra.mxu0 %v2591_v34  ;;  %892 = vmatpush1.msra.mxu1 %v2593_v35 }
 0x159   :  { %822 = vmatprep.subr.mxu0 %v2602_v37  ;;  %893 = vmatprep.subr.mxu1 %v2604_v38 }
 0x15a   :  { %823 = vmatpush1.msra.mxu0 %v2608_v39  ;;  %894 = vmatpush1.msra.mxu1 %v2610_v40 }
 0x15b   :  { %824 = vmatprep.subr.mxu0 %v2614_v41  ;;  %895 = vmatprep.subr.mxu1 %v2616_v42 }
 0x15c   :  { %825 = vmatpush1.msra.mxu0 %v2622_v43  ;;  %896 = vmatpush1.msra.mxu1 %v2624_v44 }
 0x15d   :  { %826 = vmatprep.subr.mxu0 %v2633_v46  ;;  %897 = vmatprep.subr.mxu1 %v2635_v47 }
 0x15e   :  { %827 = vmatpush1.msra.mxu0 %v2639_v48  ;;  %898 = vmatpush1.msra.mxu1 %v2641_v49 }
 0x15f   :  { %828 = vmatprep.subr.mxu0 %v2645_v50  ;;  %899 = vmatprep.subr.mxu1 %v2647_v51 }
 0x160   :  { %829 = vmatpush1.msra.mxu0 %v2653_v52  ;;  %900 = vmatpush1.msra.mxu1 %v2655_v53 }
 0x161   :  { %830 = vmatprep.subr.mxu0 %v2664_v55  ;;  %901 = vmatprep.subr.mxu1 %v2666_v56 }
 0x162   :  { %831 = vmatpush1.msra.mxu0 %v2670_v57  ;;  %902 = vmatpush1.msra.mxu1 %v2672_v58 }
 0x163   :  { %832 = vmatprep.subr.mxu0 %v3673_v27  ;;  %903 = vmatprep.subr.mxu1 %v3674_v6 }
 0x164   :  { %833 = vmatpush1.msra.mxu0 %v3675_v36  ;;  %904 = vmatpush1.msra.mxu1 %v3676_v54 }
 0x165   :  { %834 = vmatprep.subr.mxu0 %v3677_v0  ;;  %905 = vmatprep.subr.mxu1 %v3678_v10  ;;  %v3699_v10 = vld [vmem:[#allocation41_spill] sm:$0xff] }
 0x166   :  { %835 = vmatpush1.msra.mxu0 %v3679_v7  ;;  %906 = vmatpush1.msra.mxu1 %v3680_v18  ;;  %v3698_v7 = vld [vmem:[#allocation43_spill] sm:$0xff] }
 0x167   :  { %836 = vmatprep.subr.mxu0 %v3681_v59  ;;  %907 = vmatprep.subr.mxu1 %v3682_v5 }
 0x168   :  { %837 = vmatpush1.msra.mxu0 %v3683_v63  ;;  %908 = vmatpush1.msra.mxu1 %v3684_v3  ;;  %v3694_v3 = vld [vmem:[#allocation18_spill] sm:$0xff] }
 0x169   :  { %838 = vmatprep.subr.mxu0 %v3685_v2  ;;  %909 = vmatprep.subr.mxu1 %v3686_v60  ;;  %v3695_v2 = vld [vmem:[#allocation19_spill] sm:$0xff] }
 0x16a   :  { %839 = vmatpush1.msra.mxu0 %v3687_v1  ;;  %910 = vmatpush1.msra.mxu1 %v3688_v62  ;;  %v3696_v1 = vld [vmem:[#allocation40_spill] sm:$0xff] }
 0x16b   :  { %840 = vmatprep.subr.mxu0 %v3689_v4  ;;  %911 = vmatprep.subr.mxu1 %v3690_v8  ;;  %v3697_v4 = vld [vmem:[#allocation42_spill] sm:$0xff] }
 0x16c   :  { %841 = vmatpush1.msra.mxu0 %v3691_v11  ;;  %874 = vmatprep.mubr.f32.mxu0 %v3692_v61 }
 0x16d   :  { %912 = vmatpush1.msra.mxu1 %v3693_v45  ;;  %945 = vmatprep.mubr.f32.mxu1 %v3692_v61 }
 0x16e   :  { %987 = vmatprep.subr.mxu0 %v3694_v3  ;;  %1058 = vmatprep.subr.mxu1 %v3695_v2 }
 0x20d   :  { %v699_v60 = vpop.f32.mrf.mxu0  ;;  %v770_v8 = vpop.f32.mrf.mxu1 }
 0x20e   :  { %v775_v63 = vadd.f32 %v699_v60, %v3696_v1  ;;  %v777_v61 = vadd.f32 %v770_v8, %v3699_v10 }
 0x20f   :  { %v701_v62 = vpop.f32.mrf.mxu0  ;;  %v772_v18 = vpop.f32.mrf.mxu1 }
 0x210   :  { %v2035_v5 = vmul.f32 -1.442695, %v775_v63  ;;  %v776_v59 = vadd.f32 %v701_v62, %v3697_v4  ;;  %v778_v45 = vadd.f32 %v772_v18, %v3698_v7 }
 0x212   :  { %2136 = vpow2.f32 %v2035_v5  ;;  %v2036_v11 = vmul.f32 -1.442695, %v776_v59  ;;  %v2037_v0 = vmul.f32 -1.442695, %v778_v45 }
 0x214   :  { %2138 = vpow2.f32 %v2036_v11 }
 0x215   :  { %2140 = vtanh.f32 %v777_v61 }
 0x216   :  { %2142 = vpow2.f32 %v2037_v0 }
 0x21f   :  { %v2137_v3 = vpop.eup %2136 }
 0x220   :  { %v782_v54 = vadd.f32 1.0, %v2137_v3 }
 0x221   :  { %v2139_v2 = vpop.eup %2138 }
 0x222   :  { %2144 = vrcp.f32 %v782_v54  ;;  %v788_v60 = vadd.f32 1.0, %v2139_v2  ;;  %v2141_v63 = vpop.eup %2140  ;;  %v3721_v54 = vld [vmem:[#allocation46_spill] sm:$0xff]  ;;  %v3722_v2 = vld [vmem:[#allocation47_spill] sm:$0xff] }
 0x223   :  { %v2143_v1 = vpop.eup %2142 }
 0x224   :  { %2146 = vrcp.f32 %v788_v60  ;;  %v795_v4 = vadd.f32 1.0, %v2143_v1 }
 0x226   :  { %2148 = vrcp.f32 %v795_v4 }
 0x22f   :  { %v2145_v5 = vpop.eup %2144 }
 0x230   :  { %v799_v62 = vmul.f32 %v2145_v5, %v2141_v63  ;;  %v3723_v63 = vld [vmem:[#allocation45_spill] sm:$0xff] }
 0x231   :  { %v2147_v59 = vpop.eup %2146 }
 0x232   :  { %v798_v11 = vmul.f32 %v2147_v59, %v2917_v9 }
 0x233   :  { %v2149_v10 = vpop.eup %2148 }
 0x234   :  { %v2991_v7 = vadd.f32 %v799_v62, %v798_v11 }
 0x236   :  { %2150 = vtanh.f32 %v2991_v7 }
 0x243   :  { %v2151_v18 = vpop.eup %2150 }
 0x244   :  { %v802_v8 = vmul.f32 %v2151_v18, %v2149_v10 }
 0x246   :  { %875 = vmatmul.mubr.f32.vlgmr.msra.gmra.mxu0 %v802_v8  ;;  %946 = vmatmul.mubr.f32.vlgmr.msra.gmra.mxu1 %v802_v8 }
 0x247   :  { %988 = vmatpush1.msra.mxu0 %v2515_v12  ;;  %1059 = vmatpush1.msra.mxu1 %v2517_v13  ;;  %v3700_v12 = vld [vmem:[#allocation23_spill] sm:$0xff]  ;;  %v3701_v13 = vld [vmem:[#allocation24_spill] sm:$0xff] }
 0x248   :  { %989 = vmatprep.subr.mxu0 %v2521_v14  ;;  %1060 = vmatprep.subr.mxu1 %v2523_v15  ;;  %v3702_v14 = vld [vmem:[#allocation25_spill] sm:$0xff]  ;;  %v3703_v15 = vld [vmem:[#allocation26_spill] sm:$0xff] }
 0x249   :  { %990 = vmatpush1.msra.mxu0 %v2529_v16  ;;  %1061 = vmatpush1.msra.mxu1 %v2531_v17  ;;  %v3704_v16 = vld [vmem:[#allocation27_spill] sm:$0xff]  ;;  %v3705_v17 = vld [vmem:[#allocation28_spill] sm:$0xff] }
 0x24a   :  { %991 = vmatprep.subr.mxu0 %v2540_v19  ;;  %1062 = vmatprep.subr.mxu1 %v2542_v20  ;;  %v3706_v19 = vld [vmem:[#allocation29_spill] sm:$0xff]  ;;  %v3707_v20 = vld [vmem:[#allocation30_spill] sm:$0xff] }
 0x24b   :  { %992 = vmatpush1.msra.mxu0 %v2546_v21  ;;  %1063 = vmatpush1.msra.mxu1 %v2548_v22  ;;  %v3708_v21 = vld [vmem:[#allocation31_spill] sm:$0xff]  ;;  %v3709_v22 = vld [vmem:[#allocation32_spill] sm:$0xff] }
 0x24c   :  { %993 = vmatprep.subr.mxu0 %v2552_v23  ;;  %1064 = vmatprep.subr.mxu1 %v2554_v24  ;;  %v3710_v23 = vld [vmem:[#allocation33_spill] sm:$0xff]  ;;  %v3711_v24 = vld [vmem:[#allocation34_spill] sm:$0xff] }
 0x24d   :  { %994 = vmatpush1.msra.mxu0 %v2560_v25  ;;  %1065 = vmatpush1.msra.mxu1 %v2562_v26  ;;  %v3712_v25 = vld [vmem:[#allocation35_spill] sm:$0xff]  ;;  %v3713_v26 = vld [vmem:[#allocation36_spill] sm:$0xff] }
 0x24e   :  { %995 = vmatprep.subr.mxu0 %v2571_v28  ;;  %1066 = vmatprep.subr.mxu1 %v2573_v29  ;;  %v3714_v28 = vld [vmem:[#allocation37_spill] sm:$0xff]  ;;  %v3715_v29 = vld [vmem:[#allocation38_spill] sm:$0xff] }
 0x24f   :  { %996 = vmatpush1.msra.mxu0 %v2577_v30  ;;  %1067 = vmatpush1.msra.mxu1 %v2579_v31  ;;  %v3716_v30 = vmov 0.0   ;;  %v3717_v31 = vld [vmem:[#allocation39_spill] sm:$0xff] }
 0x250   :  { %997 = vmatprep.subr.mxu0 %v2583_v32  ;;  %1068 = vmatprep.subr.mxu1 %v2585_v33  ;;  %v3058_v32 = vld [vmem:[#allocation5 + $0x1e8] sm:$0xff]  ;;  %v3061_v33 = vld [vmem:[#allocation5 + $0x1f8] sm:$0xff] }
 0x251   :  { %998 = vmatpush1.msra.mxu0 %v2591_v34  ;;  %1069 = vmatpush1.msra.mxu1 %v2593_v35  ;;  %3718 = vst [vmem:[#allocation20_spill] sm:$0xff] %v3058_v32  ;;  %3719 = vst [vmem:[#allocation21_spill] sm:$0xff] %v3061_v33  ;;  %v3720_v35 = vld [vmem:[#allocation44_spill] sm:$0xff] }
 0x252   :  { %999 = vmatprep.subr.mxu0 %v2602_v37  ;;  %1070 = vmatprep.subr.mxu1 %v2604_v38 }
 0x253   :  { %1000 = vmatpush1.msra.mxu0 %v2608_v39  ;;  %1071 = vmatpush1.msra.mxu1 %v2610_v40 }
 0x254   :  { %1001 = vmatprep.subr.mxu0 %v2614_v41  ;;  %1072 = vmatprep.subr.mxu1 %v2616_v42 }
 0x255   :  { %1002 = vmatpush1.msra.mxu0 %v2622_v43  ;;  %1073 = vmatpush1.msra.mxu1 %v2624_v44 }
 0x256   :  { %1003 = vmatprep.subr.mxu0 %v2633_v46  ;;  %1074 = vmatprep.subr.mxu1 %v2635_v47 }
 0x257   :  { %1004 = vmatpush1.msra.mxu0 %v2639_v48  ;;  %1075 = vmatpush1.msra.mxu1 %v2641_v49 }
 0x258   :  { %1005 = vmatprep.subr.mxu0 %v2645_v50  ;;  %1076 = vmatprep.subr.mxu1 %v2647_v51 }
 0x259   :  { %1006 = vmatpush1.msra.mxu0 %v2653_v52  ;;  %1077 = vmatpush1.msra.mxu1 %v2655_v53 }
 0x25a   :  { %1007 = vmatprep.subr.mxu0 %v2664_v55  ;;  %1078 = vmatprep.subr.mxu1 %v2666_v56 }
 0x25b   :  { %1008 = vmatpush1.msra.mxu0 %v2670_v57  ;;  %1079 = vmatpush1.msra.mxu1 %v2672_v58 }
 0x25c   :  { %1009 = vmatprep.subr.mxu0 %v3673_v27  ;;  %1080 = vmatprep.subr.mxu1 %v3674_v6 }
 0x25d   :  { %1010 = vmatpush1.msra.mxu0 %v3675_v36  ;;  %1081 = vmatpush1.msra.mxu1 %v3700_v12 }
 0x25e   :  { %1011 = vmatprep.subr.mxu0 %v3701_v13  ;;  %1082 = vmatprep.subr.mxu1 %v3702_v14 }
 0x25f   :  { %1012 = vmatpush1.msra.mxu0 %v3703_v15  ;;  %1083 = vmatpush1.msra.mxu1 %v3704_v16 }
 0x260   :  { %1013 = vmatprep.subr.mxu0 %v3705_v17  ;;  %1084 = vmatprep.subr.mxu1 %v3706_v19 }
 0x261   :  { %1014 = vmatpush1.msra.mxu0 %v3707_v20  ;;  %1085 = vmatpush1.msra.mxu1 %v3708_v21 }
 0x262   :  { %1015 = vmatprep.subr.mxu0 %v3709_v22  ;;  %1086 = vmatprep.subr.mxu1 %v3710_v23 }
 0x263   :  { %1016 = vmatpush1.msra.mxu0 %v3711_v24  ;;  %1087 = vmatpush1.msra.mxu1 %v3712_v25 }
 0x264   :  { %1017 = vmatprep.subr.mxu0 %v3713_v26  ;;  %1088 = vmatprep.subr.mxu1 %v3714_v28 }
 0x265   :  { %1018 = vmatpush1.msra.mxu0 %v3715_v29  ;;  %1051 = vmatprep.mubr.f32.mxu0 %v3716_v30 }
 0x266   :  { %1089 = vmatpush1.msra.mxu1 %v3717_v31  ;;  %1122 = vmatprep.mubr.f32.mxu1 %v3716_v30 }
 0x267   :  { %1164 = vmatprep.subr.mxu0 %v3058_v32  ;;  %1235 = vmatprep.subr.mxu1 %v3061_v33 }
 0x306   :  { %v876_v34 = vpop.f32.mrf.mxu0  ;;  %v947_v61 = vpop.f32.mrf.mxu1 }
 0x307   :  { %v952_v37 = vadd.f32 %v876_v34, %v3720_v35  ;;  %v954_v1 = vadd.f32 %v947_v61, %v3723_v63  ;;  %v3087_v63 = vld [vmem:[#allocation5 + $0x1d0] sm:$0xff] }
 0x308   :  { %v878_v38 = vpop.f32.mrf.mxu0  ;;  %v949_v3 = vpop.f32.mrf.mxu1 }
 0x309   :  { %v2038_v9 = vmul.f32 -1.442695, %v952_v37  ;;  %v953_v0 = vadd.f32 %v878_v38, %v3721_v54  ;;  %v955_v60 = vadd.f32 %v949_v3, %v3722_v2  ;;  %v3075_v3 = vld [vmem:[#allocation5 + $0x1f0] sm:$0xff]  ;;  %v3078_v2 = vld [vmem:[#allocation5 + $0x1c8] sm:$0xff] }
 0x30b   :  { %2152 = vpow2.f32 %v2038_v9  ;;  %v2039_v45 = vmul.f32 -1.442695, %v953_v0  ;;  %v2040_v5 = vmul.f32 -1.442695, %v955_v60  ;;  %v3084_v60 = vld [vmem:[#allocation5 + $0x1c0] sm:$0xff] }
 0x30d   :  { %2154 = vpow2.f32 %v2039_v45  ;;  %v3072_v45 = vld [vmem:[#allocation5 + $0x1e0] sm:$0xff] }
 0x30e   :  { %2156 = vtanh.f32 %v954_v1  ;;  %v3090_v1 = vld [vmem:[#allocation5 + $0x1a8] sm:$0xff] }
 0x30f   :  { %2158 = vpow2.f32 %v2040_v5  ;;  %v3093_v5 = vld [vmem:[#allocation5 + $0x1b8] sm:$0xff] }
 0x318   :  { %v2153_v62 = vpop.eup %2152 }
 0x319   :  { %v959_v59 = vadd.f32 1.0, %v2153_v62  ;;  %v3096_v62 = vld [vmem:[#allocation5 + $0x1a0] sm:$0xff] }
 0x31a   :  { %v2155_v4 = vpop.eup %2154 }
 0x31b   :  { %2160 = vrcp.f32 %v959_v59  ;;  %v965_v11 = vadd.f32 1.0, %v2155_v4  ;;  %v2157_v10 = vpop.eup %2156  ;;  %v3099_v59 = vld [vmem:[#allocation5 + $0x1b0] sm:$0xff]  ;;  %v3102_v4 = vld [vmem:[#allocation5 + $0x188] sm:$0xff] }
 0x31c   :  { %v2159_v18 = vpop.eup %2158 }
 0x31d   :  { %2162 = vrcp.f32 %v965_v11  ;;  %v972_v37 = vadd.f32 1.0, %v2159_v18  ;;  %v3105_v11 = vld [vmem:[#allocation5 + $0x198] sm:$0xff]  ;;  %v3111_v18 = vld [vmem:[#allocation5 + $0x190] sm:$0xff] }
 0x31f   :  { %2164 = vrcp.f32 %v972_v37  ;;  %v3123_v37 = vld [vmem:[#allocation5 + $0x170] sm:$0xff] }
 0x320   :  { %3725 = vst [vmem:[#allocation18_spill] sm:$0xff] %v3123_v37 }
 0x328   :  { %v2161_v8 = vpop.eup %2160 }
 0x329   :  { %v976_v34 = vmul.f32 %v2161_v8, %v2157_v10  ;;  %v3108_v10 = vld [vmem:[#allocation5 + $0x180] sm:$0xff]  ;;  %v3114_v8 = vld [vmem:[#allocation5 + $0x168] sm:$0xff] }
 0x32a   :  { %v2163_v35 = vpop.eup %2162 }
 0x32b   :  { %v975_v38 = vmul.f32 %v2163_v35, %v2991_v7  ;;  %v3081_v7 = vld [vmem:[#allocation5 + $0x1d8] sm:$0xff]  ;;  %v3120_v35 = vld [vmem:[#allocation5 + $0x160] sm:$0xff] }
 0x32c   :  { %v2165_v54 = vpop.eup %2164  ;;  %3724 = vst [vmem:[#allocation22_spill] sm:$0xff] %v3120_v35 }
 0x32d   :  { %v3069_v9 = vadd.f32 %v976_v34, %v975_v38  ;;  %v3117_v34 = vld [vmem:[#allocation5 + $0x178] sm:$0xff]  ;;  %v3126_v38 = vld [vmem:[#allocation5 + $0x148] sm:$0xff] }
 0x32f   :  { %2166 = vtanh.f32 %v3069_v9 }
 0x33c   :  { %v2167_v0 = vpop.eup %2166 }
 0x33d   :  { %v979_v61 = vmul.f32 %v2167_v0, %v2165_v54  ;;  %v3129_v54 = vld [vmem:[#allocation5 + $0x158] sm:$0xff]  ;;  %v3132_v0 = vld [vmem:[#allocation5 + $0x140] sm:$0xff] }
 0x33f   :  { %1052 = vmatmul.mubr.f32.vlgmr.msra.gmra.mxu0 %v979_v61  ;;  %1123 = vmatmul.mubr.f32.vlgmr.msra.gmra.mxu1 %v979_v61  ;;  %v3135_v61 = vld [vmem:[#allocation5 + $0x150] sm:$0xff] }
 0x340   :  { %1165 = vmatpush1.msra.mxu0 %v3072_v45  ;;  %1236 = vmatpush1.msra.mxu1 %v3075_v3 }
 0x341   :  { %1166 = vmatprep.subr.mxu0 %v3078_v2  ;;  %1237 = vmatprep.subr.mxu1 %v3081_v7 }
 0x342   :  { %1167 = vmatpush1.msra.mxu0 %v3084_v60  ;;  %1238 = vmatpush1.msra.mxu1 %v3087_v63 }
 0x343   :  { %1168 = vmatprep.subr.mxu0 %v3090_v1  ;;  %1239 = vmatprep.subr.mxu1 %v3093_v5 }
 0x344   :  { %1169 = vmatpush1.msra.mxu0 %v3096_v62  ;;  %1240 = vmatpush1.msra.mxu1 %v3099_v59 }
 0x345   :  { %1170 = vmatprep.subr.mxu0 %v3102_v4  ;;  %1241 = vmatprep.subr.mxu1 %v3105_v11 }
 0x346   :  { %1171 = vmatpush1.msra.mxu0 %v3108_v10  ;;  %1242 = vmatpush1.msra.mxu1 %v3111_v18 }
 0x347   :  { %1172 = vmatprep.subr.mxu0 %v3114_v8  ;;  %1243 = vmatprep.subr.mxu1 %v3117_v34 }
 0x348   :  { %1173 = vmatpush1.msra.mxu0 %v3120_v35  ;;  %1244 = vmatpush1.msra.mxu1 %v3123_v37  ;;  %v3138_v35 = vld [vmem:[#allocation5 + $0x128] sm:$0xff]  ;;  %v3141_v37 = vld [vmem:[#allocation5 + $0x138] sm:$0xff] }
 0x349   :  { %1174 = vmatprep.subr.mxu0 %v3126_v38  ;;  %1245 = vmatprep.subr.mxu1 %v3129_v54 }
 0x34a   :  { %1175 = vmatpush1.msra.mxu0 %v3132_v0  ;;  %1246 = vmatpush1.msra.mxu1 %v3135_v61 }
 0x34b   :  { %1176 = vmatprep.subr.mxu0 %v3138_v35  ;;  %1247 = vmatprep.subr.mxu1 %v3141_v37 }
 0x34c   :  { %1177 = vmatpush1.msra.mxu0 %v2608_v39  ;;  %1248 = vmatpush1.msra.mxu1 %v2610_v40  ;;  %v3726_v40 = vld [vmem:[#allocation48_spill] sm:$0xff] }
 0x34d   :  { %1178 = vmatprep.subr.mxu0 %v2614_v41  ;;  %1249 = vmatprep.subr.mxu1 %v2616_v42 }
 0x34e   :  { %1179 = vmatpush1.msra.mxu0 %v2622_v43  ;;  %1250 = vmatpush1.msra.mxu1 %v2624_v44  ;;  %v3727_v44 = vld [vmem:[#allocation50_spill] sm:$0xff] }
 0x34f   :  { %1180 = vmatprep.subr.mxu0 %v2633_v46  ;;  %1251 = vmatprep.subr.mxu1 %v2635_v47 }
 0x350   :  { %1181 = vmatpush1.msra.mxu0 %v2639_v48  ;;  %1252 = vmatpush1.msra.mxu1 %v2641_v49 }
 0x351   :  { %1182 = vmatprep.subr.mxu0 %v2645_v50  ;;  %1253 = vmatprep.subr.mxu1 %v2647_v51  ;;  %v3728_v50 = vld [vmem:[#allocation51_spill] sm:$0xff] }
 0x352   :  { %1183 = vmatpush1.msra.mxu0 %v2653_v52  ;;  %1254 = vmatpush1.msra.mxu1 %v2655_v53  ;;  %v3729_v52 = vld [vmem:[#allocation49_spill] sm:$0xff] }
 0x353   :  { %1184 = vmatprep.subr.mxu0 %v2664_v55  ;;  %1255 = vmatprep.subr.mxu1 %v2666_v56 }
 0x354   :  { %1185 = vmatpush1.msra.mxu0 %v2670_v57  ;;  %1256 = vmatpush1.msra.mxu1 %v2672_v58 }
 0x355   :  { %1186 = vmatprep.subr.mxu0 %v3673_v27  ;;  %1257 = vmatprep.subr.mxu1 %v3674_v6 }
 0x356   :  { %1187 = vmatpush1.msra.mxu0 %v3675_v36  ;;  %1258 = vmatpush1.msra.mxu1 %v3700_v12 }
 0x357   :  { %1188 = vmatprep.subr.mxu0 %v3701_v13  ;;  %1259 = vmatprep.subr.mxu1 %v3702_v14 }
 0x358   :  { %1189 = vmatpush1.msra.mxu0 %v3703_v15  ;;  %1260 = vmatpush1.msra.mxu1 %v3704_v16 }
 0x359   :  { %1190 = vmatprep.subr.mxu0 %v3705_v17  ;;  %1261 = vmatprep.subr.mxu1 %v3706_v19 }
 0x35a   :  { %1191 = vmatpush1.msra.mxu0 %v3707_v20  ;;  %1262 = vmatpush1.msra.mxu1 %v3708_v21 }
 0x35b   :  { %1192 = vmatprep.subr.mxu0 %v3709_v22  ;;  %1263 = vmatprep.subr.mxu1 %v3710_v23  ;;  %v3730_v22 = vld [vmem:[#allocation22_spill] sm:$0xff] }
 0x35c   :  { %1193 = vmatpush1.msra.mxu0 %v3711_v24  ;;  %1264 = vmatpush1.msra.mxu1 %v3712_v25  ;;  %v3731_v23 = vld [vmem:[#allocation18_spill] sm:$0xff]  ;;  %v3218_v24 = vld [vmem:[#allocation5 + $0x120] sm:$0xff]  ;;  %v3221_v25 = vld [vmem:[#allocation5 + $0x130] sm:$0xff] }
 0x35d   :  { %1194 = vmatprep.subr.mxu0 %v3713_v26  ;;  %1265 = vmatprep.subr.mxu1 %v3714_v28  ;;  %v3224_v26 = vld [vmem:[#allocation5 + $0x108] sm:$0xff]  ;;  %v3227_v28 = vld [vmem:[#allocation5 + $0x118] sm:$0xff] }
 0x35e   :  { %1195 = vmatpush1.msra.mxu0 %v3715_v29  ;;  %1228 = vmatprep.mubr.f32.mxu0 %v3716_v30  ;;  %v3230_v29 = vld [vmem:[#allocation5 + $0x100] sm:$0xff] }
 0x35f   :  { %1266 = vmatpush1.msra.mxu1 %v3717_v31  ;;  %1299 = vmatprep.mubr.f32.mxu1 %v3716_v30  ;;  %v3233_v31 = vld [vmem:[#allocation5 + $0x110] sm:$0xff] }
 0x360   :  { %1341 = vmatprep.subr.mxu0 %v3058_v32  ;;  %1412 = vmatprep.subr.mxu1 %v3061_v33 }
 0x3ff   :  { %v1053_v39 = vpop.f32.mrf.mxu0  ;;  %v1124_v47 = vpop.f32.mrf.mxu1 }
 0x400   :  { %v1129_v41 = vadd.f32 %v1053_v39, %v3726_v40  ;;  %v1131_v53 = vadd.f32 %v1124_v47, %v3729_v52  ;;  %v3239_v39 = vld [vmem:[#allocation5 + $0xf8] sm:$0xff]  ;;  %v3242_v40 = vld [vmem:[#allocation5 + $0xe0] sm:$0xff]  ;;  %v3260_v47 = vld [vmem:[#allocation5 + $0xa8] sm:$0xff] }
 0x401   :  { %v1055_v42 = vpop.f32.mrf.mxu0  ;;  %v1126_v49 = vpop.f32.mrf.mxu1  ;;  %v3275_v52 = vld [vmem:[#allocation5 + $0x98] sm:$0xff] }
 0x402   :  { %v2041_v43 = vmul.f32 -1.442695, %v1129_v41  ;;  %v1130_v46 = vadd.f32 %v1055_v42, %v3727_v44  ;;  %v1132_v51 = vadd.f32 %v1126_v49, %v3728_v50  ;;  %v3245_v41 = vld [vmem:[#allocation5 + $0xf0] sm:$0xff]  ;;  %v3248_v42 = vld [vmem:[#allocation5 + $0xc8] sm:$0xff]  ;;  %v3254_v44 = vld [vmem:[#allocation5 + $0xc0] sm:$0xff] }
 0x403   :  { %v3266_v49 = vld [vmem:[#allocation5 + $0xa0] sm:$0xff]  ;;  %v3269_v50 = vld [vmem:[#allocation5 + $0xb0] sm:$0xff] }
 0x404   :  { %2168 = vpow2.f32 %v2041_v43  ;;  %v2042_v48 = vmul.f32 -1.442695, %v1130_v46  ;;  %v2043_v55 = vmul.f32 -1.442695, %v1132_v51  ;;  %v3251_v43 = vld [vmem:[#allocation5 + $0xd8] sm:$0xff]  ;;  %v3257_v46 = vld [vmem:[#allocation5 + $0xd0] sm:$0xff] }
 0x405   :  { %v3272_v51 = vld [vmem:[#allocation5 + $0x88] sm:$0xff] }
 0x406   :  { %2170 = vpow2.f32 %v2042_v48  ;;  %v3263_v48 = vld [vmem:[#allocation5 + $0xb8] sm:$0xff] }
 0x407   :  { %2172 = vtanh.f32 %v1131_v53  ;;  %v3278_v53 = vld [vmem:[#allocation5 + $0x80] sm:$0xff] }
 0x408   :  { %2174 = vpow2.f32 %v2043_v55  ;;  %v3281_v55 = vld [vmem:[#allocation5 + $0x90] sm:$0xff] }
 0x409   :  { %3732 = vst [vmem:[#allocation19_spill] sm:$0xff] %v3281_v55 }
 0x411   :  { %v2169_v56 = vpop.eup %2168 }
 0x412   :  { %v1136_v57 = vadd.f32 1.0, %v2169_v56  ;;  %v3284_v56 = vld [vmem:[#allocation5 + $0x68] sm:$0xff] }
 0x413   :  { %v2171_v58 = vpop.eup %2170  ;;  %3733 = vst [vmem:[#allocation40_spill] sm:$0xff] %v3284_v56 }
 0x414   :  { %2176 = vrcp.f32 %v1136_v57  ;;  %v1142_v27 = vadd.f32 1.0, %v2171_v58  ;;  %v2173_v6 = vpop.eup %2172  ;;  %v3287_v57 = vld [vmem:[#allocation5 + $0x78] sm:$0xff]  ;;  %v3290_v58 = vld [vmem:[#allocation5 + $0x60] sm:$0xff] }
 0x415   :  { %v2175_v36 = vpop.eup %2174  ;;  %3734 = vst [vmem:[#allocation42_spill] sm:$0xff] %v3287_v57  ;;  %3735 = vst [vmem:[#allocation43_spill] sm:$0xff] %v3290_v58 }
 0x416   :  { %2178 = vrcp.f32 %v1142_v27  ;;  %v1149_v15 = vadd.f32 1.0, %v2175_v36  ;;  %v3293_v27 = vld [vmem:[#allocation5 + $0x70] sm:$0xff]  ;;  %v3299_v36 = vld [vmem:[#allocation5 + $0x58] sm:$0xff] }
 0x417   :  { %3736 = vst [vmem:[#allocation41_spill] sm:$0xff] %v3293_v27  ;;  %3738 = vst [vmem:[#allocation24_spill] sm:$0xff] %v3299_v36 }
 0x418   :  { %2180 = vrcp.f32 %v1149_v15  ;;  %v3311_v15 = vld [vmem:[#allocation5 + $0x38] sm:$0xff] }
 0x419   :  { %3742 = vst [vmem:[#allocation28_spill] sm:$0xff] %v3311_v15 }
 0x421   :  { %v2177_v12 = vpop.eup %2176 }
 0x422   :  { %v1153_v13 = vmul.f32 %v2177_v12, %v2173_v6  ;;  %v3296_v6 = vld [vmem:[#allocation5 + $0x48] sm:$0xff]  ;;  %v3302_v12 = vld [vmem:[#allocation5 + $0x40] sm:$0xff] }
 0x423   :  { %v2179_v14 = vpop.eup %2178  ;;  %3737 = vst [vmem:[#allocation23_spill] sm:$0xff] %v3296_v6  ;;  %3739 = vst [vmem:[#allocation25_spill] sm:$0xff] %v3302_v12 }
 0x424   :  { %v1152_v16 = vmul.f32 %v2179_v14, %v3069_v9  ;;  %v3236_v9 = vld [vmem:[#allocation5 + $0xe8] sm:$0xff] }
 0x425   :  { %v2181_v19 = vpop.eup %2180  ;;  %v3308_v14 = vld [vmem:[#allocation5 + $0x28] sm:$0xff] }
 0x426   :  { %v3191_v17 = vadd.f32 %v1153_v13, %v1152_v16  ;;  %v3305_v13 = vld [vmem:[#allocation5 + $0x50] sm:$0xff]  ;;  %3741 = vst [vmem:[#allocation27_spill] sm:$0xff] %v3308_v14  ;;  %v3314_v16 = vld [vmem:[#allocation5 + $0x20] sm:$0xff] }
 0x427   :  { %3740 = vst [vmem:[#allocation26_spill] sm:$0xff] %v3305_v13  ;;  %3743 = vst [vmem:[#allocation29_spill] sm:$0xff] %v3314_v16 }
 0x428   :  { %2182 = vtanh.f32 %v3191_v17 }
 0x435   :  { %v2183_v20 = vpop.eup %2182 }
 0x436   :  { %v1156_v21 = vmul.f32 %v2183_v20, %v2181_v19  ;;  %v3317_v19 = vld [vmem:[#allocation5 + $0x30] sm:$0xff]  ;;  %v3320_v20 = vld [vmem:[#allocation5 + $0x8] sm:$0xff] }
 0x437   :  { %3744 = vst [vmem:[#allocation30_spill] sm:$0xff] %v3317_v19  ;;  %3745 = vst [vmem:[#allocation31_spill] sm:$0xff] %v3320_v20 }
 0x438   :  { %1229 = vmatmul.mubr.f32.vlgmr.msra.gmra.mxu0 %v1156_v21  ;;  %1300 = vmatmul.mubr.f32.vlgmr.msra.gmra.mxu1 %v1156_v21  ;;  %v3323_v21 = vld [vmem:[#allocation5 + $0x18] sm:$0xff] }
 0x439   :  { %1342 = vmatpush1.msra.mxu0 %v3072_v45  ;;  %1413 = vmatpush1.msra.mxu1 %v3075_v3  ;;  %3746 = vst [vmem:[#allocation32_spill] sm:$0xff] %v3323_v21 }
 0x43a   :  { %1343 = vmatprep.subr.mxu0 %v3078_v2  ;;  %1414 = vmatprep.subr.mxu1 %v3081_v7 }
 0x43b   :  { %1344 = vmatpush1.msra.mxu0 %v3084_v60  ;;  %1415 = vmatpush1.msra.mxu1 %v3087_v63 }
 0x43c   :  { %1345 = vmatprep.subr.mxu0 %v3090_v1  ;;  %1416 = vmatprep.subr.mxu1 %v3093_v5 }
 0x43d   :  { %1346 = vmatpush1.msra.mxu0 %v3096_v62  ;;  %1417 = vmatpush1.msra.mxu1 %v3099_v59 }
 0x43e   :  { %1347 = vmatprep.subr.mxu0 %v3102_v4  ;;  %1418 = vmatprep.subr.mxu1 %v3105_v11 }
 0x43f   :  { %1348 = vmatpush1.msra.mxu0 %v3108_v10  ;;  %1419 = vmatpush1.msra.mxu1 %v3111_v18 }
 0x440   :  { %1349 = vmatprep.subr.mxu0 %v3114_v8  ;;  %1420 = vmatprep.subr.mxu1 %v3117_v34 }
 0x441   :  { %1350 = vmatpush1.msra.mxu0 %v3730_v22  ;;  %1421 = vmatpush1.msra.mxu1 %v3731_v23 }
 0x442   :  { %1351 = vmatprep.subr.mxu0 %v3126_v38  ;;  %1422 = vmatprep.subr.mxu1 %v3129_v54 }
 0x443   :  { %1352 = vmatpush1.msra.mxu0 %v3132_v0  ;;  %1423 = vmatpush1.msra.mxu1 %v3135_v61 }
 0x444   :  { %1353 = vmatprep.subr.mxu0 %v3138_v35  ;;  %1424 = vmatprep.subr.mxu1 %v3141_v37 }
 0x445   :  { %1354 = vmatpush1.msra.mxu0 %v3218_v24  ;;  %1425 = vmatpush1.msra.mxu1 %v3221_v25 }
 0x446   :  { %1355 = vmatprep.subr.mxu0 %v3224_v26  ;;  %1426 = vmatprep.subr.mxu1 %v3227_v28 }
 0x447   :  { %1356 = vmatpush1.msra.mxu0 %v3230_v29  ;;  %1427 = vmatpush1.msra.mxu1 %v3233_v31 }
 0x448   :  { %1357 = vmatprep.subr.mxu0 %v3236_v9  ;;  %1428 = vmatprep.subr.mxu1 %v3239_v39 }
 0x449   :  { %1358 = vmatpush1.msra.mxu0 %v3242_v40  ;;  %1429 = vmatpush1.msra.mxu1 %v3245_v41 }
 0x44a   :  { %1359 = vmatprep.subr.mxu0 %v3248_v42  ;;  %1430 = vmatprep.subr.mxu1 %v3251_v43 }
 0x44b   :  { %1360 = vmatpush1.msra.mxu0 %v3254_v44  ;;  %1431 = vmatpush1.msra.mxu1 %v3257_v46 }
 0x44c   :  { %1361 = vmatprep.subr.mxu0 %v3260_v47  ;;  %1432 = vmatprep.subr.mxu1 %v3263_v48 }
 0x44d   :  { %1362 = vmatpush1.msra.mxu0 %v3266_v49  ;;  %1433 = vmatpush1.msra.mxu1 %v3269_v50 }
 0x44e   :  { %1363 = vmatprep.subr.mxu0 %v3272_v51  ;;  %1434 = vmatprep.subr.mxu1 %v3275_v52 }
 0x44f   :  { %1364 = vmatpush1.msra.mxu0 %v3278_v53  ;;  %1435 = vmatpush1.msra.mxu1 %v3281_v55 }
 0x450   :  { %1365 = vmatprep.subr.mxu0 %v3284_v56  ;;  %1436 = vmatprep.subr.mxu1 %v3287_v57  ;;  %v3752_v57 = vld [vmem:[#allocation53_spill] sm:$0xff] }
 0x451   :  { %1366 = vmatpush1.msra.mxu0 %v3290_v58  ;;  %1437 = vmatpush1.msra.mxu1 %v3293_v27  ;;  %v3751_v58 = vld [vmem:[#allocation55_spill] sm:$0xff] }
 0x452   :  { %1367 = vmatprep.subr.mxu0 %v3296_v6  ;;  %1438 = vmatprep.subr.mxu1 %v3299_v36 }
 0x453   :  { %1368 = vmatpush1.msra.mxu0 %v3302_v12  ;;  %1439 = vmatpush1.msra.mxu1 %v3305_v13  ;;  %v3750_v12 = vld [vmem:[#allocation54_spill] sm:$0xff] }
 0x454   :  { %1369 = vmatprep.subr.mxu0 %v3308_v14  ;;  %1440 = vmatprep.subr.mxu1 %v3311_v15  ;;  %v3326_v14 = vld [vmem:[#allocation5] sm:$0xff]  ;;  %v3330_v15 = vld [vmem:[#allocation5 + $0x10] sm:$0xff] }
 0x455   :  { %1370 = vmatpush1.msra.mxu0 %v3314_v16  ;;  %1441 = vmatpush1.msra.mxu1 %v3317_v19  ;;  %3747 = vst [vmem:[#allocation33_spill] sm:$0xff] %v3326_v14  ;;  %3748 = vst [vmem:[#allocation34_spill] sm:$0xff] %v3330_v15  ;;  %v3749_v19 = vld [vmem:[#allocation52_spill] sm:$0xff] }
 0x456   :  { %1371 = vmatprep.subr.mxu0 %v3320_v20  ;;  %1442 = vmatprep.subr.mxu1 %v3323_v21 }
 0x457   :  { %1372 = vmatpush1.msra.mxu0 %v3326_v14  ;;  %1405 = vmatprep.mubr.f32.mxu0 %v3716_v30 }
 0x458   :  { %1443 = vmatpush1.msra.mxu1 %v3330_v15  ;;  %1476 = vmatprep.mubr.f32.mxu1 %v3716_v30 }
 0x459   :  { %1518 = vmatprep.subr.mxu0 %v3058_v32  ;;  %1589 = vmatprep.subr.mxu1 %v3061_v33 }
 0x4f8   :  { %v1230_v20 = vpop.f32.mrf.mxu0  ;;  %v1301_v14 = vpop.f32.mrf.mxu1 }
 0x4f9   :  { %v1306_v16 = vadd.f32 %v1230_v20, %v3749_v19  ;;  %v1308_v30 = vadd.f32 %v1301_v14, %v3752_v57  ;;  %v3758_v14 = vld [vmem:[#allocation23_spill] sm:$0xff] }
 0x4fa   :  { %v1232_v21 = vpop.f32.mrf.mxu0  ;;  %v1303_v27 = vpop.f32.mrf.mxu1 }
 0x4fb   :  { %v2044_v13 = vmul.f32 -1.442695, %v1306_v16  ;;  %v1307_v36 = vadd.f32 %v1232_v21, %v3750_v12  ;;  %v1309_v15 = vadd.f32 %v1303_v27, %v3751_v58  ;;  %v3757_v27 = vld [vmem:[#allocation41_spill] sm:$0xff] }
 0x4fd   :  { %2184 = vpow2.f32 %v2044_v13  ;;  %v2045_v6 = vmul.f32 -1.442695, %v1307_v36  ;;  %v2046_v56 = vmul.f32 -1.442695, %v1309_v15  ;;  %v3759_v15 = vld [vmem:[#allocation24_spill] sm:$0xff] }
 0x4ff   :  { %2186 = vpow2.f32 %v2045_v6 }
 0x500   :  { %2188 = vtanh.f32 %v1308_v30 }
 0x501   :  { %2190 = vpow2.f32 %v2046_v56  ;;  %v3756_v56 = vld [vmem:[#allocation43_spill] sm:$0xff] }
 0x50a   :  { %v2185_v32 = vpop.eup %2184 }
 0x50b   :  { %v1313_v55 = vadd.f32 1.0, %v2185_v32 }
 0x50c   :  { %v2187_v33 = vpop.eup %2186 }
 0x50d   :  { %2192 = vrcp.f32 %v1313_v55  ;;  %v1319_v19 = vadd.f32 1.0, %v2187_v33  ;;  %v2189_v16 = vpop.eup %2188  ;;  %v3753_v33 = vld [vmem:[#allocation19_spill] sm:$0xff]  ;;  %v3755_v55 = vld [vmem:[#allocation42_spill] sm:$0xff] }
 0x50e   :  { %v2191_v12 = vpop.eup %2190 }
 0x50f   :  { %2194 = vrcp.f32 %v1319_v19  ;;  %v1326_v6 = vadd.f32 1.0, %v2191_v12  ;;  %v3760_v19 = vld [vmem:[#allocation25_spill] sm:$0xff]  ;;  %v3762_v12 = vld [vmem:[#allocation27_spill] sm:$0xff] }
 0x511   :  { %2196 = vrcp.f32 %v1326_v6  ;;  %v3766_v6 = vld [vmem:[#allocation31_spill] sm:$0xff] }
 0x51a   :  { %v2193_v13 = vpop.eup %2192 }
 0x51b   :  { %v1330_v20 = vmul.f32 %v2193_v13, %v2189_v16  ;;  %v3761_v16 = vld [vmem:[#allocation26_spill] sm:$0xff]  ;;  %v3763_v13 = vld [vmem:[#allocation28_spill] sm:$0xff] }
 0x51c   :  { %v2195_v36 = vpop.eup %2194 }
 0x51d   :  { %v1329_v21 = vmul.f32 %v2195_v36, %v3191_v17  ;;  %v3754_v17 = vld [vmem:[#allocation40_spill] sm:$0xff]  ;;  %v3765_v36 = vld [vmem:[#allocation30_spill] sm:$0xff] }
 0x51e   :  { %v2197_v32 = vpop.eup %2196 }
 0x51f   :  { %v3341_v58 = vadd.f32 %v1330_v20, %v1329_v21  ;;  %v3764_v20 = vld [vmem:[#allocation29_spill] sm:$0xff]  ;;  %v3767_v21 = vld [vmem:[#allocation32_spill] sm:$0xff] }
 0x521   :  { %2198 = vtanh.f32 %v3341_v58 }
 0x52e   :  { %v2199_v30 = vpop.eup %2198 }
 0x52f   :  { %v1333_v57 = vmul.f32 %v2199_v30, %v2197_v32  ;;  %v3768_v32 = vld [vmem:[#allocation33_spill] sm:$0xff]  ;;  %v3769_v30 = vmov 0.0  }
 0x531   :  { %1406 = vmatmul.mubr.f32.vlgmr.msra.gmra.mxu0 %v1333_v57  ;;  %1477 = vmatmul.mubr.f32.vlgmr.msra.gmra.mxu1 %v1333_v57  ;;  %v3770_v57 = vld [vmem:[#allocation34_spill] sm:$0xff] }
 0x532   :  { %1519 = vmatpush1.msra.mxu0 %v3072_v45  ;;  %1590 = vmatpush1.msra.mxu1 %v3075_v3 }
 0x533   :  { %1520 = vmatprep.subr.mxu0 %v3078_v2  ;;  %1591 = vmatprep.subr.mxu1 %v3081_v7 }
 0x534   :  { %1521 = vmatpush1.msra.mxu0 %v3084_v60  ;;  %1592 = vmatpush1.msra.mxu1 %v3087_v63 }
 0x535   :  { %1522 = vmatprep.subr.mxu0 %v3090_v1  ;;  %1593 = vmatprep.subr.mxu1 %v3093_v5 }
 0x536   :  { %1523 = vmatpush1.msra.mxu0 %v3096_v62  ;;  %1594 = vmatpush1.msra.mxu1 %v3099_v59 }
 0x537   :  { %1524 = vmatprep.subr.mxu0 %v3102_v4  ;;  %1595 = vmatprep.subr.mxu1 %v3105_v11 }
 0x538   :  { %1525 = vmatpush1.msra.mxu0 %v3108_v10  ;;  %1596 = vmatpush1.msra.mxu1 %v3111_v18 }
 0x539   :  { %1526 = vmatprep.subr.mxu0 %v3114_v8  ;;  %1597 = vmatprep.subr.mxu1 %v3117_v34 }
 0x53a   :  { %1527 = vmatpush1.msra.mxu0 %v3730_v22  ;;  %1598 = vmatpush1.msra.mxu1 %v3731_v23 }
 0x53b   :  { %1528 = vmatprep.subr.mxu0 %v3126_v38  ;;  %1599 = vmatprep.subr.mxu1 %v3129_v54 }
 0x53c   :  { %1529 = vmatpush1.msra.mxu0 %v3132_v0  ;;  %1600 = vmatpush1.msra.mxu1 %v3135_v61 }
 0x53d   :  { %1530 = vmatprep.subr.mxu0 %v3138_v35  ;;  %1601 = vmatprep.subr.mxu1 %v3141_v37 }
 0x53e   :  { %1531 = vmatpush1.msra.mxu0 %v3218_v24  ;;  %1602 = vmatpush1.msra.mxu1 %v3221_v25 }
 0x53f   :  { %1532 = vmatprep.subr.mxu0 %v3224_v26  ;;  %1603 = vmatprep.subr.mxu1 %v3227_v28 }
 0x540   :  { %1533 = vmatpush1.msra.mxu0 %v3230_v29  ;;  %1604 = vmatpush1.msra.mxu1 %v3233_v31 }
 0x541   :  { %1534 = vmatprep.subr.mxu0 %v3236_v9  ;;  %1605 = vmatprep.subr.mxu1 %v3239_v39 }
 0x542   :  { %1535 = vmatpush1.msra.mxu0 %v3242_v40  ;;  %1606 = vmatpush1.msra.mxu1 %v3245_v41 }
 0x543   :  { %1536 = vmatprep.subr.mxu0 %v3248_v42  ;;  %1607 = vmatprep.subr.mxu1 %v3251_v43 }
 0x544   :  { %1537 = vmatpush1.msra.mxu0 %v3254_v44  ;;  %1608 = vmatpush1.msra.mxu1 %v3257_v46 }
 0x545   :  { %1538 = vmatprep.subr.mxu0 %v3260_v47  ;;  %1609 = vmatprep.subr.mxu1 %v3263_v48 }
 0x546   :  { %1539 = vmatpush1.msra.mxu0 %v3266_v49  ;;  %1610 = vmatpush1.msra.mxu1 %v3269_v50 }
 0x547   :  { %1540 = vmatprep.subr.mxu0 %v3272_v51  ;;  %1611 = vmatprep.subr.mxu1 %v3275_v52 }
 0x548   :  { %1541 = vmatpush1.msra.mxu0 %v3278_v53  ;;  %1612 = vmatpush1.msra.mxu1 %v3753_v33 }
 0x549   :  { %1542 = vmatprep.subr.mxu0 %v3754_v17  ;;  %1613 = vmatprep.subr.mxu1 %v3755_v55  ;;  %v3776_v55 = vld [vmem:[#allocation57_spill] sm:$0xff] }
 0x54a   :  { %1543 = vmatpush1.msra.mxu0 %v3756_v56  ;;  %1614 = vmatpush1.msra.mxu1 %v3757_v27  ;;  %v3775_v56 = vld [vmem:[#allocation59_spill] sm:$0xff] }
 0x54b   :  { %1544 = vmatprep.subr.mxu0 %v3758_v14  ;;  %1615 = vmatprep.subr.mxu1 %v3759_v15 }
 0x54c   :  { %1545 = vmatpush1.msra.mxu0 %v3760_v19  ;;  %1616 = vmatpush1.msra.mxu1 %v3761_v16  ;;  %v3771_v16 = vld [vmem:[#allocation20_spill] sm:$0xff] }
 0x54d   :  { %1546 = vmatprep.subr.mxu0 %v3762_v12  ;;  %1617 = vmatprep.subr.mxu1 %v3763_v13  ;;  %v3772_v12 = vld [vmem:[#allocation21_spill] sm:$0xff] }
 0x54e   :  { %1547 = vmatpush1.msra.mxu0 %v3764_v20  ;;  %1618 = vmatpush1.msra.mxu1 %v3765_v36  ;;  %v3773_v20 = vld [vmem:[#allocation56_spill] sm:$0xff] }
 0x54f   :  { %1548 = vmatprep.subr.mxu0 %v3766_v6  ;;  %1619 = vmatprep.subr.mxu1 %v3767_v21  ;;  %v3774_v6 = vld [vmem:[#allocation58_spill] sm:$0xff] }
 0x550   :  { %1549 = vmatpush1.msra.mxu0 %v3768_v32  ;;  %1582 = vmatprep.mubr.f32.mxu0 %v3769_v30 }
 0x551   :  { %1620 = vmatpush1.msra.mxu1 %v3770_v57  ;;  %1653 = vmatprep.mubr.f32.mxu1 %v3769_v30 }
 0x552   :  { %1695 = vmatprep.subr.mxu0 %v3771_v16  ;;  %1766 = vmatprep.subr.mxu1 %v3772_v12 }
 0x5f1   :  { %v1407_v13 = vpop.f32.mrf.mxu0  ;;  %v1478_v21 = vpop.f32.mrf.mxu1 }
 0x5f2   :  { %v1483_v19 = vadd.f32 %v1407_v13, %v3773_v20  ;;  %v1485_v30 = vadd.f32 %v1478_v21, %v3776_v55 }
 0x5f3   :  { %v1409_v36 = vpop.f32.mrf.mxu0  ;;  %v1480_v27 = vpop.f32.mrf.mxu1 }
 0x5f4   :  { %v2047_v15 = vmul.f32 -1.442695, %v1483_v19  ;;  %v1484_v14 = vadd.f32 %v1409_v36, %v3774_v6  ;;  %v1486_v57 = vadd.f32 %v1480_v27, %v3775_v56 }
 0x5f6   :  { %2200 = vpow2.f32 %v2047_v15  ;;  %v2048_v32 = vmul.f32 -1.442695, %v1484_v14  ;;  %v2049_v17 = vmul.f32 -1.442695, %v1486_v57  ;;  %v1886_v57 = vld [vmem:[#allocation8 + $0x70] sm:$0xff] }
 0x5f8   :  { %2202 = vpow2.f32 %v2048_v32 }
 0x5f9   :  { %2204 = vtanh.f32 %v1485_v30  ;;  %v1887_v30 = vld [vmem:[#allocation8 + $0x78] sm:$0xff] }
 0x5fa   :  { %2206 = vpow2.f32 %v2049_v17 }
 0x603   :  { %v2201_v16 = vpop.eup %2200 }
 0x604   :  { %v1490_v33 = vadd.f32 1.0, %v2201_v16  ;;  %v1885_v16 = vld [vmem:[#allocation8 + $0x68] sm:$0xff] }
 0x605   :  { %v2203_v12 = vpop.eup %2202 }
 0x606   :  { %2208 = vrcp.f32 %v1490_v33  ;;  %v1496_v13 = vadd.f32 1.0, %v2203_v12  ;;  %v2205_v19 = vpop.eup %2204  ;;  %v1884_v12 = vld [vmem:[#allocation8 + $0x60] sm:$0xff] }
 0x607   :  { %v2207_v20 = vpop.eup %2206 }
 0x608   :  { %2210 = vrcp.f32 %v1496_v13  ;;  %v1503_v6 = vadd.f32 1.0, %v2207_v20  ;;  %v1883_v13 = vld [vmem:[#allocation8 + $0x58] sm:$0xff]  ;;  %v1881_v20 = vld [vmem:[#allocation8 + $0x48] sm:$0xff] }
 0x60a   :  { %2212 = vrcp.f32 %v1503_v6  ;;  %v1877_v6 = vld [vmem:[#allocation8 + $0x28] sm:$0xff] }
 0x613   :  { %v2209_v15 = vpop.eup %2208 }
 0x614   :  { %v1507_v36 = vmul.f32 %v2209_v15, %v2205_v19  ;;  %v1882_v19 = vld [vmem:[#allocation8 + $0x50] sm:$0xff]  ;;  %v1880_v15 = vld [vmem:[#allocation8 + $0x40] sm:$0xff] }
 0x615   :  { %v2211_v14 = vpop.eup %2210 }
 0x616   :  { %v1506_v32 = vmul.f32 %v2211_v14, %v3341_v58  ;;  %v1878_v14 = vld [vmem:[#allocation8 + $0x30] sm:$0xff] }
 0x617   :  { %v2213_v55 = vpop.eup %2212 }
 0x618   :  { %v3415_v56 = vadd.f32 %v1507_v36, %v1506_v32  ;;  %v1879_v36 = vld [vmem:[#allocation8 + $0x38] sm:$0xff]  ;;  %v1876_v32 = vld [vmem:[#allocation8 + $0x20] sm:$0xff] }
 0x61a   :  { %2214 = vtanh.f32 %v3415_v56 }
 0x627   :  { %v2215_v27 = vpop.eup %2214 }
 0x628   :  { %v1510_v21 = vmul.f32 %v2215_v27, %v2213_v55  ;;  %v1874_v55 = vld [vmem:[#allocation8 + $0x10] sm:$0xff]  ;;  %v1873_v27 = vld [vmem:[#allocation8 + $0x8] sm:$0xff] }
 0x62a   :  { %1583 = vmatmul.mubr.f32.vlgmr.msra.gmra.mxu0 %v1510_v21  ;;  %1654 = vmatmul.mubr.f32.vlgmr.msra.gmra.mxu1 %v1510_v21  ;;  %v1872_v21 = vld [vmem:[#allocation8] sm:$0xff] }
 0x62b   :  { %1696 = vmatpush1.msra.mxu0 %v3072_v45  ;;  %1767 = vmatpush1.msra.mxu1 %v3075_v3  ;;  %v3777_v45 = vld [vmem:[#allocation19_spill] sm:$0xff]  ;;  %v3778_v3 = vld [vmem:[#allocation40_spill] sm:$0xff] }
 0x62c   :  { %1697 = vmatprep.subr.mxu0 %v3078_v2  ;;  %1768 = vmatprep.subr.mxu1 %v3081_v7  ;;  %v3779_v2 = vld [vmem:[#allocation42_spill] sm:$0xff]  ;;  %v3780_v7 = vld [vmem:[#allocation43_spill] sm:$0xff] }
 0x62d   :  { %1698 = vmatpush1.msra.mxu0 %v3084_v60  ;;  %1769 = vmatpush1.msra.mxu1 %v3087_v63  ;;  %v3781_v60 = vld [vmem:[#allocation41_spill] sm:$0xff]  ;;  %v3782_v63 = vld [vmem:[#allocation23_spill] sm:$0xff] }
 0x62e   :  { %1699 = vmatprep.subr.mxu0 %v3090_v1  ;;  %1770 = vmatprep.subr.mxu1 %v3093_v5  ;;  %v3783_v1 = vld [vmem:[#allocation24_spill] sm:$0xff]  ;;  %v3784_v5 = vld [vmem:[#allocation25_spill] sm:$0xff] }
 0x62f   :  { %1700 = vmatpush1.msra.mxu0 %v3096_v62  ;;  %1771 = vmatpush1.msra.mxu1 %v3099_v59  ;;  %v3785_v62 = vld [vmem:[#allocation26_spill] sm:$0xff]  ;;  %v3786_v59 = vld [vmem:[#allocation27_spill] sm:$0xff] }
 0x630   :  { %1701 = vmatprep.subr.mxu0 %v3102_v4  ;;  %1772 = vmatprep.subr.mxu1 %v3105_v11  ;;  %v3787_v4 = vld [vmem:[#allocation28_spill] sm:$0xff]  ;;  %v3788_v11 = vld [vmem:[#allocation29_spill] sm:$0xff] }
 0x631   :  { %1702 = vmatpush1.msra.mxu0 %v3108_v10  ;;  %1773 = vmatpush1.msra.mxu1 %v3111_v18  ;;  %v3789_v10 = vld [vmem:[#allocation30_spill] sm:$0xff]  ;;  %v3790_v18 = vld [vmem:[#allocation31_spill] sm:$0xff] }
 0x632   :  { %1703 = vmatprep.subr.mxu0 %v3114_v8  ;;  %1774 = vmatprep.subr.mxu1 %v3117_v34  ;;  %v3791_v8 = vld [vmem:[#allocation32_spill] sm:$0xff]  ;;  %v3792_v34 = vld [vmem:[#allocation33_spill] sm:$0xff] }
 0x633   :  { %1704 = vmatpush1.msra.mxu0 %v3730_v22  ;;  %1775 = vmatpush1.msra.mxu1 %v3731_v23  ;;  %v3796_v23 = vld [vmem:[#allocation62_spill] sm:$0xff] }
 0x634   :  { %1705 = vmatprep.subr.mxu0 %v3126_v38  ;;  %1776 = vmatprep.subr.mxu1 %v3129_v54  ;;  %v3795_v54 = vld [vmem:[#allocation60_spill] sm:$0xff] }
 0x635   :  { %1706 = vmatpush1.msra.mxu0 %v3132_v0  ;;  %1777 = vmatpush1.msra.mxu1 %v3135_v61 }
 0x636   :  { %1707 = vmatprep.subr.mxu0 %v3138_v35  ;;  %1778 = vmatprep.subr.mxu1 %v3141_v37  ;;  %v3793_v35 = vmov 0.0   ;;  %v3794_v37 = vld [vmem:[#allocation34_spill] sm:$0xff] }
 0x637   :  { %1708 = vmatpush1.msra.mxu0 %v3218_v24  ;;  %1779 = vmatpush1.msra.mxu1 %v3221_v25 }
 0x638   :  { %1709 = vmatprep.subr.mxu0 %v3224_v26  ;;  %1780 = vmatprep.subr.mxu1 %v3227_v28 }
 0x639   :  { %1710 = vmatpush1.msra.mxu0 %v3230_v29  ;;  %1781 = vmatpush1.msra.mxu1 %v3233_v31  ;;  %v3797_v29 = vld [vmem:[#allocation63_spill] sm:$0xff] }
 0x63a   :  { %1711 = vmatprep.subr.mxu0 %v3236_v9  ;;  %1782 = vmatprep.subr.mxu1 %v3239_v39  ;;  %v3798_v9 = vld [vmem:[#allocation61_spill] sm:$0xff] }
 0x63b   :  { %1712 = vmatpush1.msra.mxu0 %v3242_v40  ;;  %1783 = vmatpush1.msra.mxu1 %v3245_v41 }
 0x63c   :  { %1713 = vmatprep.subr.mxu0 %v3248_v42  ;;  %1784 = vmatprep.subr.mxu1 %v3251_v43 }
 0x63d   :  { %1714 = vmatpush1.msra.mxu0 %v3254_v44  ;;  %1785 = vmatpush1.msra.mxu1 %v3257_v46 }
 0x63e   :  { %1715 = vmatprep.subr.mxu0 %v3260_v47  ;;  %1786 = vmatprep.subr.mxu1 %v3263_v48 }
 0x63f   :  { %1716 = vmatpush1.msra.mxu0 %v3266_v49  ;;  %1787 = vmatpush1.msra.mxu1 %v3269_v50 }
 0x640   :  { %1717 = vmatprep.subr.mxu0 %v3272_v51  ;;  %1788 = vmatprep.subr.mxu1 %v3275_v52 }
 0x641   :  { %1718 = vmatpush1.msra.mxu0 %v3278_v53  ;;  %1789 = vmatpush1.msra.mxu1 %v3777_v45 }
 0x642   :  { %1719 = vmatprep.subr.mxu0 %v3778_v3  ;;  %1790 = vmatprep.subr.mxu1 %v3779_v2  ;;  %v3799_v3 = vld [vmem:[#allocation64_spill] sm:$0xff] }
 0x643   :  { %1720 = vmatpush1.msra.mxu0 %v3780_v7  ;;  %1791 = vmatpush1.msra.mxu1 %v3781_v60 }
 0x644   :  { %1721 = vmatprep.subr.mxu0 %v3782_v63  ;;  %1792 = vmatprep.subr.mxu1 %v3783_v1  ;;  %v3800_v63 = vld [vmem:[#allocation66_spill] sm:$0xff] }
 0x645   :  { %1722 = vmatpush1.msra.mxu0 %v3784_v5  ;;  %1793 = vmatpush1.msra.mxu1 %v3785_v62 }
 0x646   :  { %1723 = vmatprep.subr.mxu0 %v3786_v59  ;;  %1794 = vmatprep.subr.mxu1 %v3787_v4  ;;  %v3801_v4 = vld [vmem:[#allocation67_spill] sm:$0xff] }
 0x647   :  { %1724 = vmatpush1.msra.mxu0 %v3788_v11  ;;  %1795 = vmatpush1.msra.mxu1 %v3789_v10  ;;  %v3802_v10 = vld [vmem:[#allocation65_spill] sm:$0xff] }
 0x648   :  { %1725 = vmatprep.subr.mxu0 %v3790_v18  ;;  %1796 = vmatprep.subr.mxu1 %v3791_v8 }
 0x649   :  { %1726 = vmatpush1.msra.mxu0 %v3792_v34  ;;  %1759 = vmatprep.mubr.f32.mxu0 %v3793_v35 }
 0x64a   :  { %1797 = vmatpush1.msra.mxu1 %v3794_v37  ;;  %1830 = vmatprep.mubr.f32.mxu1 %v3793_v35 }
 0x64b   :  { %2074 = vmatprep.subr.mxu0 %v3793_v35 }
 0x6ea   :  { %v1584_v38 = vpop.f32.mrf.mxu0  ;;  %v1655_v25 = vpop.f32.mrf.mxu1 }
 0x6eb   :  { %v1660_v0 = vadd.f32 %v1584_v38, %v3795_v54  ;;  %v1662_v39 = vadd.f32 %v1655_v25, %v3798_v9 }
 0x6ec   :  { %v1586_v61 = vpop.f32.mrf.mxu0  ;;  %v1657_v28 = vpop.f32.mrf.mxu1 }
 0x6ed   :  { %v2050_v22 = vmul.f32 -1.442695, %v1660_v0  ;;  %v1661_v24 = vadd.f32 %v1586_v61, %v3796_v23  ;;  %v1663_v31 = vadd.f32 %v1657_v28, %v3797_v29 }
 0x6ef   :  { %2216 = vpow2.f32 %v2050_v22  ;;  %v2051_v26 = vmul.f32 -1.442695, %v1661_v24  ;;  %v2052_v40 = vmul.f32 -1.442695, %v1663_v31 }
 0x6f1   :  { %2218 = vpow2.f32 %v2051_v26 }
 0x6f2   :  { %2220 = vtanh.f32 %v1662_v39 }
 0x6f3   :  { %2222 = vpow2.f32 %v2052_v40 }
 0x6fc   :  { %v2217_v41 = vpop.eup %2216 }
 0x6fd   :  { %v1667_v42 = vadd.f32 1.0, %v2217_v41 }
 0x6fe   :  { %v2219_v43 = vpop.eup %2218 }
 0x6ff   :  { %2224 = vrcp.f32 %v1667_v42  ;;  %v1673_v44 = vadd.f32 1.0, %v2219_v43  ;;  %v2221_v46 = vpop.eup %2220 }
 0x700   :  { %v2223_v47 = vpop.eup %2222 }
 0x701   :  { %2226 = vrcp.f32 %v1673_v44  ;;  %v1680_v51 = vadd.f32 1.0, %v2223_v47 }
 0x703   :  { %2228 = vrcp.f32 %v1680_v51 }
 0x70c   :  { %v2225_v48 = vpop.eup %2224 }
 0x70d   :  { %v1684_v49 = vmul.f32 %v2225_v48, %v2221_v46 }
 0x70e   :  { %v2227_v50 = vpop.eup %2226 }
 0x70f   :  { %v1683_v52 = vmul.f32 %v2227_v50, %v3415_v56  ;;  %v1875_v56 = vld [vmem:[#allocation8 + $0x18] sm:$0xff] }
 0x710   :  { %v2229_v58 = vpop.eup %2228 }
 0x711   :  { %v3488_v53 = vadd.f32 %v1684_v49, %v1683_v52 }
 0x713   :  { %2230 = vtanh.f32 %v3488_v53 }
 0x720   :  { %v2231_v33 = vpop.eup %2230 }
 0x721   :  { %v1687_v17 = vmul.f32 %v2231_v33, %v2229_v58 }
 0x723   :  { %1760 = vmatmul.mubr.f32.vlgmr.msra.gmra.mxu0 %v1687_v17  ;;  %1831 = vmatmul.mubr.f32.vlgmr.msra.gmra.mxu1 %v1687_v17 }
 0x724   :  { %2075 = vmatpush3.msra.mxu0 %v1887_v30  ;;  %2106 = vmatprep.mubr.msk.f32.mxu0 %vm2427_vm1, %v3793_v35 }
 0x725   :  { %2076 = vmatprep.subr.mxu0 %v3793_v35 }
 0x726   :  { %2077 = vmatpush3.msra.mxu0 %v1886_v57 }
 0x727   :  { %2078 = vmatprep.subr.mxu0 %v3793_v35 }
 0x728   :  { %2079 = vmatpush3.msra.mxu0 %v1885_v16 }
 0x729   :  { %2080 = vmatprep.subr.mxu0 %v3793_v35 }
 0x72a   :  { %2081 = vmatpush3.msra.mxu0 %v1884_v12 }
 0x72b   :  { %2082 = vmatprep.subr.mxu0 %v3793_v35 }
 0x72c   :  { %2083 = vmatpush3.msra.mxu0 %v1883_v13 }
 0x72d   :  { %2084 = vmatprep.subr.mxu0 %v3793_v35 }
 0x72e   :  { %2085 = vmatpush3.msra.mxu0 %v1882_v19 }
 0x72f   :  { %2086 = vmatprep.subr.mxu0 %v3793_v35 }
 0x730   :  { %2087 = vmatpush3.msra.mxu0 %v1881_v20 }
 0x731   :  { %2088 = vmatprep.subr.mxu0 %v3793_v35 }
 0x732   :  { %2089 = vmatpush3.msra.mxu0 %v1880_v15 }
 0x733   :  { %2090 = vmatprep.subr.mxu0 %v3793_v35 }
 0x734   :  { %2091 = vmatpush3.msra.mxu0 %v1879_v36 }
 0x735   :  { %2092 = vmatprep.subr.mxu0 %v3793_v35 }
 0x736   :  { %2093 = vmatpush3.msra.mxu0 %v1878_v14 }
 0x737   :  { %2094 = vmatprep.subr.mxu0 %v3793_v35 }
 0x738   :  { %2095 = vmatpush3.msra.mxu0 %v1877_v6 }
 0x739   :  { %2096 = vmatprep.subr.mxu0 %v3793_v35 }
 0x73a   :  { %2097 = vmatpush3.msra.mxu0 %v1876_v32 }
 0x73b   :  { %2098 = vmatprep.subr.mxu0 %v3793_v35 }
 0x73c   :  { %2099 = vmatpush3.msra.mxu0 %v1875_v56 }
 0x73d   :  { %2100 = vmatprep.subr.mxu0 %v3793_v35 }
 0x73e   :  { %2101 = vmatpush3.msra.mxu0 %v1874_v55 }
 0x73f   :  { %2102 = vmatprep.subr.mxu0 %v3793_v35 }
 0x740   :  { %2103 = vmatpush3.msra.mxu0 %v1873_v27 }
 0x741   :  { %2104 = vmatprep.subr.mxu0 %v3793_v35 }
 0x742   :  { %2105 = vmatpush3.msra.mxu0 %v1872_v21 }
 0x7e3   :  { %v1761_v45 = vpop.f32.mrf.mxu0  ;;  %v1832_v5 = vpop.f32.mrf.mxu1 }
 0x7e4   :  { %v1837_v2 = vadd.f32 %v1761_v45, %v3799_v3  ;;  %v1839_v18 = vadd.f32 %v1832_v5, %v3802_v10 }
 0x7e5   :  { %v1763_v7 = vpop.f32.mrf.mxu0  ;;  %v1834_v59 = vpop.f32.mrf.mxu1 }
 0x7e6   :  { %v2053_v60 = vmul.f32 -1.442695, %v1837_v2  ;;  %v1838_v1 = vadd.f32 %v1763_v7, %v3800_v63  ;;  %v1840_v11 = vadd.f32 %v1834_v59, %v3801_v4 }
 0x7e8   :  { %2232 = vpow2.f32 %v2053_v60  ;;  %v2054_v62 = vmul.f32 -1.442695, %v1838_v1  ;;  %v2055_v8 = vmul.f32 -1.442695, %v1840_v11 }
 0x7ea   :  { %2234 = vpow2.f32 %v2054_v62 }
 0x7eb   :  { %2236 = vtanh.f32 %v1839_v18 }
 0x7ec   :  { %2238 = vpow2.f32 %v2055_v8 }
 0x7f5   :  { %v2233_v34 = vpop.eup %2232 }
 0x7f6   :  { %v1844_v35 = vadd.f32 1.0, %v2233_v34 }
 0x7f7   :  { %v2235_v37 = vpop.eup %2234 }
 0x7f8   :  { %2240 = vrcp.f32 %v1844_v35  ;;  %v1850_v38 = vadd.f32 1.0, %v2235_v37  ;;  %v2237_v54 = vpop.eup %2236 }
 0x7f9   :  { %v2239_v0 = vpop.eup %2238 }
 0x7fa   :  { %2242 = vrcp.f32 %v1850_v38  ;;  %v1857_v24 = vadd.f32 1.0, %v2239_v0 }
 0x7fc   :  { %2244 = vrcp.f32 %v1857_v24 }
 0x805   :  { %v2241_v61 = vpop.eup %2240 }
 0x806   :  { %v1861_v22 = vmul.f32 %v2241_v61, %v2237_v54 }
 0x807   :  { %v2243_v23 = vpop.eup %2242 }
 0x808   :  { %v1860_v25 = vmul.f32 %v2243_v23, %v3488_v53 }
 0x809   :  { %v2245_v28 = vpop.eup %2244 }
 0x80a   :  { %v1862_v26 = vadd.f32 %v1861_v22, %v1860_v25 }
 0x80c   :  { %1871 = vst [vmem:[#allocation13] sm:$0xff] %v1862_v26  ;;  %2246 = vtanh.f32 %v1862_v26 }
 0x819   :  { %v2247_v29 = vpop.eup %2246 }
 0x81a   :  { %v1864_v31 = vmul.f32 %v2247_v29, %v2245_v28 }
 0x81c   :  { %2107 = vmatmul.mubr.f32.vlgmr.msra.gmra.mxu0 %v1864_v31  ;;  %1870 = vst [vmem:[#allocation11] sm:$0xff] %v1864_v31 }
 0x81d   :  { %2363 = shalt.err (!%p2360_p0)
}
 0x81e   :  { %1985 = dma.vmem_to_hbm [thread:$0]  %s1983_s25, 128, %s3531_s7, [#allocation12]  }
 0x81f   :  { %s2429_s29 = smov [#allocation13]  }
 0x820   :  { %s1992_s30 = sshll.u32 %s2429_s29, 4  ;;  %s1993_s30 = int_to_ptr.vmem [resolvable:$true] %s1992_s30 }
 0x821   :  { %s2372_s9 = scalar_lea.vmem %s1993_s30, 128  ;;  %p2377_p2 = scmp.lt.s32.totalorder %s1993_s30, %s1993_s30 }
 0x822   :  { %p2373_p1 = scmp.ne.s32.totalorder %s1993_s30, %s2372_s9  ;;  %p2378_p3 = scmp.lt.s32.totalorder %s2372_s9, %s2372_s9 }
 0x824   :  { %p2379_p4 = por %p2378_p3, %p2377_p2 }
 0x826   :  { %p2380_p5 = pnand %p2379_p4, %p2373_p1 }
 0x828   :  { %2383 = shalt.err (!%p2380_p5)
}
 0x829   :  { %1995 = dma.vmem_to_hbm [thread:$0]  %s1993_s30, 128, %s3532_s8, [#allocation12]   ;;  %v2056_v9 = vld [vmem:[%s3529_s5] ss:$0 sm:$0xff] }
 0x82a   :  { %s2430_s13 = smov [#allocation10]  }
 0x82b   :  { %s1972_s7 = sshll.u32 %s2430_s13, 4  ;;  %s1973_s7 = int_to_ptr.vmem [resolvable:$true] %s1972_s7 }
 0x82c   :  { %s2392_s14 = scalar_lea.vmem %s1973_s7, 128  ;;  %p2397_p7 = scmp.lt.s32.totalorder %s1973_s7, %s1973_s7 }
 0x82d   :  { %p2393_p6 = scmp.ne.s32.totalorder %s1973_s7, %s2392_s14  ;;  %p2398_p8 = scmp.lt.s32.totalorder %s2392_s14, %s2392_s14 }
 0x82f   :  { %p2399_p9 = por %p2398_p8, %p2397_p7 }
 0x831   :  { %p2400_p10 = pnand %p2399_p9, %p2393_p6 }
 0x8dc   :  { %v1961_v39 = vpop.f32.mrf.mxu0 }
 0x8dd   :  { %v1962_v40 = vadd.f32 %v2056_v9, %v1961_v39 }
 0x8de   :  { %v2108_v41 = vpop.f32.mrf.mxu0 }
 0x8df   :  { %1965 = vst [vmem:[#allocation10] sm:$0xff] %v1962_v40 }
 0x8e0   :  { %2403 = shalt.err (!%p2400_p10)
}
 0x8e1   :  { %1975 = dma.vmem_to_hbm [thread:$0]  %s1973_s7, 128, %s3530_s6, [#allocation7]  }
 0x8e2   :  { %2416 = dma.done.wait [#allocation7], 128  }
 0x8e3   :  { %2417 = vsyncadd [#allocation7], 4294967168 }
 0x8e4   :  { %2418 = dma.done.wait [#allocation12], 256  }
 0x8e5   :  { %2419 = vsyncadd [#allocation12], 4294967040 }
 0x8e6   :  { %2005 = vsyncpa [#allocation6], 1 }
 0x8e7   :  { %2006 = vsyncpa [#allocation9], 1 }
 0x8e8   :  { %2007 = vsyncpa [#allocation7], 1 }
 0x8e9   :  { %2008 = vsyncpa [#allocation12], 1 }

</bundles_post_ra>
